<compile_context>
chip_gen: v7x
topology: tpu7x:2x2x1
jax: 0.10.0
libtpu: 0.0.40
codegen_flags: <defaults>
</compile_context>

<pallas_src>
import functools

import jax
import jax.numpy as jnp
from jax.experimental import pallas as pl
from jax.experimental.pallas import tpu as pltpu


# ----------------------------------------------------------------------------
# Fused Pallas kernel: one grid step == one tile of TB images, all VMEM-resident.
# ----------------------------------------------------------------------------
def _lenet_fused_kernel(x_ref, m1_ref, b1_ref, r1_ref, c1_ref,
                        m2_ref, b2_ref, r2_ref, c2_ref,
                        m3_ref, b3_ref, fc1w_ref, fc1b_ref,
                        outw_ref, outb_ref, o_ref):
    f32 = jnp.float32
    bf16 = jnp.bfloat16

    def conv_sigmoid(act, m_ref, b_ref):
        # act: (Hin, Win*Cin) f32, layout act[i, j*Cin + ci].
        # m_ref: (K, Win*Cin, Wout*Cout) bf16 banded matrices (one per vertical
        #        tap) -- the in-kernel replacement for im2col.
        # Valid conv == sum over K row-shifted slices @ banded matrix.
        k = m_ref.shape[0]
        oh = act.shape[0] - k + 1
        n = m_ref.shape[2]
        lhs = act.astype(bf16)                    # cast once, reuse for all taps
        acc = jnp.zeros((oh, n), f32)
        for kh in range(k):                       # static unroll (K == 5)
            acc = acc + jnp.dot(lhs[kh:kh + oh, :], m_ref[kh],
                                preferred_element_type=f32)
        z = acc + b_ref[...]                      # bias broadcast, f32
        return 1.0 / (1.0 + jnp.exp(-z))          # exact sigmoid, f32 epilogue

    def avg_pool(act, r_ref, c_ref):
        # AvgPool2d(2,2) == R @ act @ C with tiny selection matrices.
        # The 1/4 factor is pre-folded into C at pack time (exact in bf16).
        t = jnp.dot(r_ref[...], act.astype(bf16), preferred_element_type=f32)
        return jnp.dot(t.astype(bf16), c_ref[...], preferred_element_type=f32)

    tb = x_ref.shape[0]
    feats = []
    for b in range(tb):                           # static unroll over tile images
        x = x_ref[b]                              # (H, W*C) f32, this image
        a1 = conv_sigmoid(x, m1_ref, b1_ref)      # (28, 28*6)
        p1 = avg_pool(a1, r1_ref, c1_ref)         # (14, 14*6)
        a2 = conv_sigmoid(p1, m2_ref, b2_ref)     # (10, 10*16)
        p2 = avg_pool(a2, r2_ref, c2_ref)         # (5, 5*16)
        feats.append(conv_sigmoid(p2, m3_ref, b3_ref))   # (1, 120) == flatten

    f = feats[0] if tb == 1 else jnp.concatenate(feats, axis=0)   # (TB, 120)

    h = jnp.tanh(jnp.dot(f.astype(bf16), fc1w_ref[...],
                         preferred_element_type=f32) + fc1b_ref[...])   # (TB, 84)
    logits = jnp.dot(h.astype(bf16), outw_ref[...],
                     preferred_element_type=f32) + outb_ref[...]        # (TB, 128)
    o_ref[...] = logits.astype(o_ref.dtype)


# ----------------------------------------------------------------------------
# Weight packing (plain JAX, done once outside the hot path).
# ----------------------------------------------------------------------------
def _round_up(x, m):
    return (x + m - 1) // m * m


def _band_matrices(w, win, wdtype):
    """Pack torch-layout conv weight (Cout, Cin, Kh, Kw) into Kh banded
    matrices M[kh] of shape (Win*Cin, Wout*Cout) such that, with activations
    laid out as act2d[i, j*Cin + ci],
        conv2d = sum_kh act2d[kh:kh+Hout, :] @ M[kh]."""
    cout, cin, khs, kws = w.shape
    wout = win - kws + 1
    jin = jnp.arange(win)[:, None]                         # input column
    oj = jnp.arange(wout)[None, :]                         # output column
    kw = jin - oj                                          # horizontal tap
    valid = ((kw >= 0) & (kw < kws)).astype(jnp.float32)   # (win, wout)
    kw_c = jnp.clip(kw, 0, kws - 1)
    mats = []
    for kh in range(khs):
        wk = jnp.transpose(w[:, :, kh, :], (2, 1, 0))      # (kws, cin, cout)
        blk = wk[kw_c] * valid[:, :, None, None]           # (win, wout, cin, cout)
        m = jnp.transpose(blk, (0, 2, 1, 3)).reshape(win * cin, wout * cout)
        mats.append(m)
    return jnp.stack(mats, axis=0).astype(wdtype)          # (Kh, Win*Cin, Wout*Cout)


def _bias_row(b, wout):
    # bias_row[j*Cout + co] = b[co]
    return jnp.tile(b, wout)[None, :].astype(jnp.float32)


def _row_pool(h, wdtype):
    ph = h // 2
    return (jnp.arange(h)[None, :] // 2 ==
            jnp.arange(ph)[:, None]).astype(wdtype)        # (H/2, H)


def _col_pool(w, c, wdtype):
    pw = w // 2
    sel = (jnp.arange(w)[:, None] // 2 ==
           jnp.arange(pw)[None, :]).astype(jnp.float32)    # (W, W/2)
    sel = sel * 0.25                                       # fold AvgPool 1/4 (exact in bf16)
    return jnp.kron(sel, jnp.eye(c, dtype=jnp.float32)).astype(wdtype)


def pack_lenet_params(params, img_hw=32, wdtype=jnp.bfloat16):
    """Pack PyTorch-layout LeNet params into the fused-kernel operand set."""
    k1 = params["conv1_w"].shape[-1]
    k2 = params["conv2_w"].shape[-1]
    k3 = params["conv3_w"].shape[-1]
    c1 = params["conv1_w"].shape[0]        # 6
    c2 = params["conv2_w"].shape[0]        # 16
    c3 = params["conv3_w"].shape[0]        # 120

    h0 = img_hw                            # 32
    h1 = h0 - k1 + 1                       # 28
    p1 = h1 // 2                           # 14
    h2 = p1 - k2 + 1                       # 10
    p2 = h2 // 2                           # 5
    h3 = p2 - k3 + 1                       # 1
    assert h3 == 1, "LeNet geometry requires conv3 output to be 1x1"
    assert params["fc1_w"].shape[1] == c3 * h3 * h3

    classes = params["out_w"].shape[0]
    fc_hidden = params["fc1_w"].shape[0]   # 84
    npad = _round_up(max(classes, 1), 128)  # lane-dense logits (>=128)

    outw = jnp.zeros((fc_hidden, npad), jnp.float32)
    outw = outw.at[:, :classes].set(params["out_w"].T)
    outb = jnp.zeros((1, npad), jnp.float32).at[0, :classes].set(params["out_b"])

    return {
        "m1": _band_matrices(params["conv1_w"], h0, wdtype),   # (5, 32, 168)
        "b1": _bias_row(params["conv1_b"], h1),                # (1, 168)
        "r1": _row_pool(h1, wdtype),                           # (14, 28)
        "c1": _col_pool(h1, c1, wdtype),                       # (168, 84)
        "m2": _band_matrices(params["conv2_w"], p1, wdtype),   # (5, 84, 160)
        "b2": _bias_row(params["conv2_b"], h2),                # (1, 160)
        "r2": _row_pool(h2, wdtype),                           # (5, 10)
        "c2": _col_pool(h2, c2, wdtype),                       # (160, 80)
        "m3": _band_matrices(params["conv3_w"], p2, wdtype),   # (5, 80, 120)
        "b3": _bias_row(params["conv3_b"], h3),                # (1, 120)
        "fc1w": params["fc1_w"].T.astype(wdtype),              # (120, 84)
        "fc1b": params["fc1_b"][None, :].astype(jnp.float32),  # (1, 84)
        "outw": outw.astype(wdtype),                           # (84, 128)
        "outb": outb,                                          # (1, 128) f32
    }


def _const_index_map(ndim):
    def imap(i):
        return (0,) * ndim
    return imap


# ----------------------------------------------------------------------------
# Forward wrapper: exactly one pallas_call for the whole network.
# ----------------------------------------------------------------------------
def lenet_forward(packed, x, classes, images_per_step=8):
    b, c, h, w = x.shape
    # Only activation-path glue: channels-last flatten of the tiny input.
    xl = jnp.transpose(x, (0, 2, 3, 1)).reshape(b, h, w * c)   # (B, H, W*C)

    # Batch tile per grid step: whole batch if small, else 8 images per step.
    tb = b if b <= images_per_step else images_per_step
    bp = _round_up(b, tb)
    if bp != b:
        xl = jnp.pad(xl, ((0, bp - b), (0, 0), (0, 0)))

    order = ("m1", "b1", "r1", "c1", "m2", "b2", "r2", "c2",
             "m3", "b3", "fc1w", "fc1b", "outw", "outb")
    weights = [packed[k] for k in order]
    npad = packed["outw"].shape[-1]

    out = pl.pallas_call(
        _lenet_fused_kernel,
        grid=(bp // tb,),
        in_specs=[pl.BlockSpec((tb, h, w * c), lambda i: (i, 0, 0))]
                 + [pl.BlockSpec(a.shape, _const_index_map(a.ndim))
                    for a in weights],
        out_specs=pl.BlockSpec((tb, npad), lambda i: (i, 0)),
        out_shape=jax.ShapeDtypeStruct((bp, npad), jnp.float32),
        compiler_params=pltpu.CompilerParams(
            dimension_semantics=("parallel",)),   # big batches shard across TCs
    )(xl, *weights)
    return out[:b, :classes]


# ----------------------------------------------------------------------------
# Plain-JAX reference (for the numerical self-check) and synthetic params.
# ----------------------------------------------------------------------------
def lenet_reference(params, x):
    def conv_sig(x, w, b):
        y = jax.lax.conv_general_dilated(
            x, w, window_strides=(1, 1), padding="VALID",
            dimension_numbers=("NCHW", "OIHW", "NCHW"), precision="highest")
        return jax.nn.sigmoid(y + b[None, :, None, None])

    def pool(x):
        s = jax.lax.reduce_window(x, 0.0, jax.lax.add,
                                  (1, 1, 2, 2), (1, 1, 2, 2), "VALID")
        return s * 0.25

    x = pool(conv_sig(x, params["conv1_w"], params["conv1_b"]))
    x = pool(conv_sig(x, params["conv2_w"], params["conv2_b"]))
    x = conv_sig(x, params["conv3_w"], params["conv3_b"])
    x = x.reshape(x.shape[0], -1)
    x = jnp.tanh(x @ params["fc1_w"].T + params["fc1_b"])
    return x @ params["out_w"].T + params["out_b"]


def init_lenet_params(key, classes):
    """Deterministic synthetic params with PyTorch-default-like uniform init."""
    keys = jax.random.split(key, 10)

    def u(k, shape, fan_in):
        bound = 1.0 / (fan_in ** 0.5)
        return jax.random.uniform(k, shape, jnp.float32, -bound, bound)

    return {
        "conv1_w": u(keys[0], (6, 1, 5, 5), 25),
        "conv1_b": u(keys[1], (6,), 25),
        "conv2_w": u(keys[2], (16, 6, 5, 5), 150),
        "conv2_b": u(keys[3], (16,), 150),
        "conv3_w": u(keys[4], (120, 16, 5, 5), 400),
        "conv3_b": u(keys[5], (120,), 400),
        "fc1_w": u(keys[6], (84, 120), 120),
        "fc1_b": u(keys[7], (84,), 120),
        "out_w": u(keys[8], (classes, 84), 84),
        "out_b": u(keys[9], (classes,), 84),
    }


if __name__ == "__main__":
    key = jax.random.PRNGKey(0)
    pkey, xkey = jax.random.split(key)

    classes = 10
    params = init_lenet_params(pkey, classes)

    # LeNet-5 geometry requires 32x32 single-channel inputs (conv3 -> 1x1x120).
    x = jax.random.normal(xkey, (2, 1, 32, 32), jnp.float32)

    packed = pack_lenet_params(params, img_hw=32)
    fwd = jax.jit(functools.partial(lenet_forward, classes=classes))

    out = fwd(packed, x)
    jax.block_until_ready(out)

    assert out.shape == (2, classes), out.shape
    assert out.dtype == jnp.float32

    # Numerical self-check vs. plain-JAX reference (bf16 MXU inputs with f32
    # accumulation in the kernel -> small, bounded error).
    ref = lenet_reference(params, x)
    max_err = float(jnp.max(jnp.abs(out - ref)))
    assert max_err < 5e-2, f"max abs error vs reference: {max_err}"

    print("KERNEL_OK")
</pallas_src>

<mosaic_0001>
module attributes {stable_mosaic.version = 11 : i64} {
  func.func @_lenet_fused_kernel(%arg0: i32, %arg1: memref<2x32x32xf32, #tpu.memory_space<vmem>>, %arg2: memref<5x32x168xbf16, #tpu.memory_space<vmem>>, %arg3: memref<1x168xf32, #tpu.memory_space<vmem>>, %arg4: memref<14x28xbf16, #tpu.memory_space<vmem>>, %arg5: memref<168x84xbf16, #tpu.memory_space<vmem>>, %arg6: memref<5x84x160xbf16, #tpu.memory_space<vmem>>, %arg7: memref<1x160xf32, #tpu.memory_space<vmem>>, %arg8: memref<5x10xbf16, #tpu.memory_space<vmem>>, %arg9: memref<160x80xbf16, #tpu.memory_space<vmem>>, %arg10: memref<5x80x120xbf16, #tpu.memory_space<vmem>>, %arg11: memref<1x120xf32, #tpu.memory_space<vmem>>, %arg12: memref<120x84xbf16, #tpu.memory_space<vmem>>, %arg13: memref<1x84xf32, #tpu.memory_space<vmem>>, %arg14: memref<84x128xbf16, #tpu.memory_space<vmem>>, %arg15: memref<1x128xf32, #tpu.memory_space<vmem>>, %arg16: memref<2x128xf32, #tpu.memory_space<vmem>>) attributes {dimension_semantics = [#tpu.dimension_semantics<parallel>], iteration_bounds = array<i64: 1>, scalar_prefetch = 0 : i64, scratch_operands = 0 : i64, tpu.core_type = #tpu.core_type<tc>, window_params = [{transform_indices = @transform_0, window_bounds = array<i64: 2, 32, 32>}, {pipeline_mode = #tpu.pipeline_mode<synchronous>, transform_indices = @transform_1, window_bounds = array<i64: 5, 32, 168>}, {pipeline_mode = #tpu.pipeline_mode<synchronous>, transform_indices = @transform_2, window_bounds = array<i64: 1, 168>}, {pipeline_mode = #tpu.pipeline_mode<synchronous>, transform_indices = @transform_3, window_bounds = array<i64: 14, 28>}, {pipeline_mode = #tpu.pipeline_mode<synchronous>, transform_indices = @transform_4, window_bounds = array<i64: 168, 84>}, {pipeline_mode = #tpu.pipeline_mode<synchronous>, transform_indices = @transform_5, window_bounds = array<i64: 5, 84, 160>}, {pipeline_mode = #tpu.pipeline_mode<synchronous>, transform_indices = @transform_6, window_bounds = array<i64: 1, 160>}, {pipeline_mode = #tpu.pipeline_mode<synchronous>, transform_indices = @transform_7, window_bounds = array<i64: 5, 10>}, {pipeline_mode = #tpu.pipeline_mode<synchronous>, transform_indices = @transform_8, window_bounds = array<i64: 160, 80>}, {pipeline_mode = #tpu.pipeline_mode<synchronous>, transform_indices = @transform_9, window_bounds = array<i64: 5, 80, 120>}, {pipeline_mode = #tpu.pipeline_mode<synchronous>, transform_indices = @transform_10, window_bounds = array<i64: 1, 120>}, {pipeline_mode = #tpu.pipeline_mode<synchronous>, transform_indices = @transform_11, window_bounds = array<i64: 120, 84>}, {pipeline_mode = #tpu.pipeline_mode<synchronous>, transform_indices = @transform_12, window_bounds = array<i64: 1, 84>}, {pipeline_mode = #tpu.pipeline_mode<synchronous>, transform_indices = @transform_13, window_bounds = array<i64: 84, 128>}, {pipeline_mode = #tpu.pipeline_mode<synchronous>, transform_indices = @transform_14, window_bounds = array<i64: 1, 128>}, {transform_indices = @transform_15, window_bounds = array<i64: 2, 128>}]} {
    %c0 = arith.constant 0 : index
    %c0_0 = arith.constant 0 : index
    %c0_1 = arith.constant 0 : index
    %0 = vector.load %arg1[%c0, %c0_0, %c0_1] : memref<2x32x32xf32, #tpu.memory_space<vmem>>, vector<1x32x32xf32>
    %1 = vector.shape_cast %0 : vector<1x32x32xf32> to vector<32x32xf32>
    %2 = arith.truncf %1 : vector<32x32xf32> to vector<32x32xbf16>
    %cst = arith.constant 0.000000e+00 : f32
    %3 = vector.broadcast %cst : f32 to vector<28x168xf32>
    %4 = vector.extract_strided_slice %2 {offsets = [0, 0], sizes = [28, 32], strides = [1, 1]} : vector<32x32xbf16> to vector<28x32xbf16>
    %c0_2 = arith.constant 0 : index
    %c0_3 = arith.constant 0 : index
    %c0_4 = arith.constant 0 : index
    %5 = vector.load %arg2[%c0_2, %c0_3, %c0_4] : memref<5x32x168xbf16, #tpu.memory_space<vmem>>, vector<1x32x168xbf16>
    %6 = vector.shape_cast %5 : vector<1x32x168xbf16> to vector<32x168xbf16>
    %cst_5 = arith.constant dense<0.000000e+00> : vector<28x168xf32>
    %7 = tpu.matmul %4, %6, %cst_5 {dimension_numbers = #tpu.dot_dimension_numbers<[1], [0], [0], [1], [0, 0, 1, 1], [], []>} : vector<28x32xbf16>, vector<32x168xbf16>, vector<28x168xf32> -> vector<28x168xf32>
    %8 = arith.addf %3, %7 : vector<28x168xf32>
    %9 = vector.extract_strided_slice %2 {offsets = [1, 0], sizes = [28, 32], strides = [1, 1]} : vector<32x32xbf16> to vector<28x32xbf16>
    %c1 = arith.constant 1 : index
    %c0_6 = arith.constant 0 : index
    %c0_7 = arith.constant 0 : index
    %10 = vector.load %arg2[%c1, %c0_6, %c0_7] : memref<5x32x168xbf16, #tpu.memory_space<vmem>>, vector<1x32x168xbf16>
    %11 = vector.shape_cast %10 : vector<1x32x168xbf16> to vector<32x168xbf16>
    %cst_8 = arith.constant dense<0.000000e+00> : vector<28x168xf32>
    %12 = tpu.matmul %9, %11, %cst_8 {dimension_numbers = #tpu.dot_dimension_numbers<[1], [0], [0], [1], [0, 0, 1, 1], [], []>} : vector<28x32xbf16>, vector<32x168xbf16>, vector<28x168xf32> -> vector<28x168xf32>
    %13 = arith.addf %8, %12 : vector<28x168xf32>
    %14 = vector.extract_strided_slice %2 {offsets = [2, 0], sizes = [28, 32], strides = [1, 1]} : vector<32x32xbf16> to vector<28x32xbf16>
    %c2 = arith.constant 2 : index
    %c0_9 = arith.constant 0 : index
    %c0_10 = arith.constant 0 : index
    %15 = vector.load %arg2[%c2, %c0_9, %c0_10] : memref<5x32x168xbf16, #tpu.memory_space<vmem>>, vector<1x32x168xbf16>
    %16 = vector.shape_cast %15 : vector<1x32x168xbf16> to vector<32x168xbf16>
    %cst_11 = arith.constant dense<0.000000e+00> : vector<28x168xf32>
    %17 = tpu.matmul %14, %16, %cst_11 {dimension_numbers = #tpu.dot_dimension_numbers<[1], [0], [0], [1], [0, 0, 1, 1], [], []>} : vector<28x32xbf16>, vector<32x168xbf16>, vector<28x168xf32> -> vector<28x168xf32>
    %18 = arith.addf %13, %17 : vector<28x168xf32>
    %19 = vector.extract_strided_slice %2 {offsets = [3, 0], sizes = [28, 32], strides = [1, 1]} : vector<32x32xbf16> to vector<28x32xbf16>
    %c3 = arith.constant 3 : index
    %c0_12 = arith.constant 0 : index
    %c0_13 = arith.constant 0 : index
    %20 = vector.load %arg2[%c3, %c0_12, %c0_13] : memref<5x32x168xbf16, #tpu.memory_space<vmem>>, vector<1x32x168xbf16>
    %21 = vector.shape_cast %20 : vector<1x32x168xbf16> to vector<32x168xbf16>
    %cst_14 = arith.constant dense<0.000000e+00> : vector<28x168xf32>
    %22 = tpu.matmul %19, %21, %cst_14 {dimension_numbers = #tpu.dot_dimension_numbers<[1], [0], [0], [1], [0, 0, 1, 1], [], []>} : vector<28x32xbf16>, vector<32x168xbf16>, vector<28x168xf32> -> vector<28x168xf32>
    %23 = arith.addf %18, %22 : vector<28x168xf32>
    %24 = vector.extract_strided_slice %2 {offsets = [4, 0], sizes = [28, 32], strides = [1, 1]} : vector<32x32xbf16> to vector<28x32xbf16>
    %c4 = arith.constant 4 : index
    %c0_15 = arith.constant 0 : index
    %c0_16 = arith.constant 0 : index
    %25 = vector.load %arg2[%c4, %c0_15, %c0_16] : memref<5x32x168xbf16, #tpu.memory_space<vmem>>, vector<1x32x168xbf16>
    %26 = vector.shape_cast %25 : vector<1x32x168xbf16> to vector<32x168xbf16>
    %cst_17 = arith.constant dense<0.000000e+00> : vector<28x168xf32>
    %27 = tpu.matmul %24, %26, %cst_17 {dimension_numbers = #tpu.dot_dimension_numbers<[1], [0], [0], [1], [0, 0, 1, 1], [], []>} : vector<28x32xbf16>, vector<32x168xbf16>, vector<28x168xf32> -> vector<28x168xf32>
    %28 = arith.addf %23, %27 : vector<28x168xf32>
    %c0_18 = arith.constant 0 : index
    %c0_19 = arith.constant 0 : index
    %29 = vector.load %arg3[%c0_18, %c0_19] : memref<1x168xf32, #tpu.memory_space<vmem>>, vector<1x168xf32>
    %30 = vector.broadcast %29 : vector<1x168xf32> to vector<28x168xf32>
    %31 = arith.addf %28, %30 : vector<28x168xf32>
    %cst_20 = arith.constant 0.000000e+00 : f32
    %32 = vector.broadcast %cst_20 : f32 to vector<28x168xf32>
    %33 = arith.subf %32, %31 : vector<28x168xf32>
    %34 = math.exp %33 : vector<28x168xf32>
    %cst_21 = arith.constant 1.000000e+00 : f32
    %35 = vector.broadcast %cst_21 : f32 to vector<28x168xf32>
    %36 = arith.addf %35, %34 : vector<28x168xf32>
    %cst_22 = arith.constant 1.000000e+00 : f32
    %37 = vector.broadcast %cst_22 : f32 to vector<28x168xf32>
    %38 = arith.divf %37, %36 : vector<28x168xf32>
    %c0_23 = arith.constant 0 : index
    %c0_24 = arith.constant 0 : index
    %39 = vector.load %arg4[%c0_23, %c0_24] : memref<14x28xbf16, #tpu.memory_space<vmem>>, vector<14x28xbf16>
    %40 = arith.truncf %38 : vector<28x168xf32> to vector<28x168xbf16>
    %cst_25 = arith.constant dense<0.000000e+00> : vector<14x168xf32>
    %41 = tpu.matmul %39, %40, %cst_25 {dimension_numbers = #tpu.dot_dimension_numbers<[1], [0], [0], [1], [0, 0, 1, 1], [], []>} : vector<14x28xbf16>, vector<28x168xbf16>, vector<14x168xf32> -> vector<14x168xf32>
    %42 = arith.truncf %41 : vector<14x168xf32> to vector<14x168xbf16>
    %c0_26 = arith.constant 0 : index
    %c0_27 = arith.constant 0 : index
    %43 = vector.load %arg5[%c0_26, %c0_27] : memref<168x84xbf16, #tpu.memory_space<vmem>>, vector<168x84xbf16>
    %cst_28 = arith.constant dense<0.000000e+00> : vector<14x84xf32>
    %44 = tpu.matmul %42, %43, %cst_28 {dimension_numbers = #tpu.dot_dimension_numbers<[1], [0], [0], [1], [0, 0, 1, 1], [], []>} : vector<14x168xbf16>, vector<168x84xbf16>, vector<14x84xf32> -> vector<14x84xf32>
    %45 = arith.truncf %44 : vector<14x84xf32> to vector<14x84xbf16>
    %cst_29 = arith.constant 0.000000e+00 : f32
    %46 = vector.broadcast %cst_29 : f32 to vector<10x160xf32>
    %47 = vector.extract_strided_slice %45 {offsets = [0, 0], sizes = [10, 84], strides = [1, 1]} : vector<14x84xbf16> to vector<10x84xbf16>
    %c0_30 = arith.constant 0 : index
    %c0_31 = arith.constant 0 : index
    %c0_32 = arith.constant 0 : index
    %48 = vector.load %arg6[%c0_30, %c0_31, %c0_32] : memref<5x84x160xbf16, #tpu.memory_space<vmem>>, vector<1x84x160xbf16>
    %49 = vector.shape_cast %48 : vector<1x84x160xbf16> to vector<84x160xbf16>
    %cst_33 = arith.constant dense<0.000000e+00> : vector<10x160xf32>
    %50 = tpu.matmul %47, %49, %cst_33 {dimension_numbers = #tpu.dot_dimension_numbers<[1], [0], [0], [1], [0, 0, 1, 1], [], []>} : vector<10x84xbf16>, vector<84x160xbf16>, vector<10x160xf32> -> vector<10x160xf32>
    %51 = arith.addf %46, %50 : vector<10x160xf32>
    %52 = vector.extract_strided_slice %45 {offsets = [1, 0], sizes = [10, 84], strides = [1, 1]} : vector<14x84xbf16> to vector<10x84xbf16>
    %c1_34 = arith.constant 1 : index
    %c0_35 = arith.constant 0 : index
    %c0_36 = arith.constant 0 : index
    %53 = vector.load %arg6[%c1_34, %c0_35, %c0_36] : memref<5x84x160xbf16, #tpu.memory_space<vmem>>, vector<1x84x160xbf16>
    %54 = vector.shape_cast %53 : vector<1x84x160xbf16> to vector<84x160xbf16>
    %cst_37 = arith.constant dense<0.000000e+00> : vector<10x160xf32>
    %55 = tpu.matmul %52, %54, %cst_37 {dimension_numbers = #tpu.dot_dimension_numbers<[1], [0], [0], [1], [0, 0, 1, 1], [], []>} : vector<10x84xbf16>, vector<84x160xbf16>, vector<10x160xf32> -> vector<10x160xf32>
    %56 = arith.addf %51, %55 : vector<10x160xf32>
    %57 = vector.extract_strided_slice %45 {offsets = [2, 0], sizes = [10, 84], strides = [1, 1]} : vector<14x84xbf16> to vector<10x84xbf16>
    %c2_38 = arith.constant 2 : index
    %c0_39 = arith.constant 0 : index
    %c0_40 = arith.constant 0 : index
    %58 = vector.load %arg6[%c2_38, %c0_39, %c0_40] : memref<5x84x160xbf16, #tpu.memory_space<vmem>>, vector<1x84x160xbf16>
    %59 = vector.shape_cast %58 : vector<1x84x160xbf16> to vector<84x160xbf16>
    %cst_41 = arith.constant dense<0.000000e+00> : vector<10x160xf32>
    %60 = tpu.matmul %57, %59, %cst_41 {dimension_numbers = #tpu.dot_dimension_numbers<[1], [0], [0], [1], [0, 0, 1, 1], [], []>} : vector<10x84xbf16>, vector<84x160xbf16>, vector<10x160xf32> -> vector<10x160xf32>
    %61 = arith.addf %56, %60 : vector<10x160xf32>
    %62 = vector.extract_strided_slice %45 {offsets = [3, 0], sizes = [10, 84], strides = [1, 1]} : vector<14x84xbf16> to vector<10x84xbf16>
    %c3_42 = arith.constant 3 : index
    %c0_43 = arith.constant 0 : index
    %c0_44 = arith.constant 0 : index
    %63 = vector.load %arg6[%c3_42, %c0_43, %c0_44] : memref<5x84x160xbf16, #tpu.memory_space<vmem>>, vector<1x84x160xbf16>
    %64 = vector.shape_cast %63 : vector<1x84x160xbf16> to vector<84x160xbf16>
    %cst_45 = arith.constant dense<0.000000e+00> : vector<10x160xf32>
    %65 = tpu.matmul %62, %64, %cst_45 {dimension_numbers = #tpu.dot_dimension_numbers<[1], [0], [0], [1], [0, 0, 1, 1], [], []>} : vector<10x84xbf16>, vector<84x160xbf16>, vector<10x160xf32> -> vector<10x160xf32>
    %66 = arith.addf %61, %65 : vector<10x160xf32>
    %67 = vector.extract_strided_slice %45 {offsets = [4, 0], sizes = [10, 84], strides = [1, 1]} : vector<14x84xbf16> to vector<10x84xbf16>
    %c4_46 = arith.constant 4 : index
    %c0_47 = arith.constant 0 : index
    %c0_48 = arith.constant 0 : index
    %68 = vector.load %arg6[%c4_46, %c0_47, %c0_48] : memref<5x84x160xbf16, #tpu.memory_space<vmem>>, vector<1x84x160xbf16>
    %69 = vector.shape_cast %68 : vector<1x84x160xbf16> to vector<84x160xbf16>
    %cst_49 = arith.constant dense<0.000000e+00> : vector<10x160xf32>
    %70 = tpu.matmul %67, %69, %cst_49 {dimension_numbers = #tpu.dot_dimension_numbers<[1], [0], [0], [1], [0, 0, 1, 1], [], []>} : vector<10x84xbf16>, vector<84x160xbf16>, vector<10x160xf32> -> vector<10x160xf32>
    %71 = arith.addf %66, %70 : vector<10x160xf32>
    %c0_50 = arith.constant 0 : index
    %c0_51 = arith.constant 0 : index
    %72 = vector.load %arg7[%c0_50, %c0_51] : memref<1x160xf32, #tpu.memory_space<vmem>>, vector<1x160xf32>
    %73 = vector.broadcast %72 : vector<1x160xf32> to vector<10x160xf32>
    %74 = arith.addf %71, %73 : vector<10x160xf32>
    %cst_52 = arith.constant 0.000000e+00 : f32
    %75 = vector.broadcast %cst_52 : f32 to vector<10x160xf32>
    %76 = arith.subf %75, %74 : vector<10x160xf32>
    %77 = math.exp %76 : vector<10x160xf32>
    %cst_53 = arith.constant 1.000000e+00 : f32
    %78 = vector.broadcast %cst_53 : f32 to vector<10x160xf32>
    %79 = arith.addf %78, %77 : vector<10x160xf32>
    %cst_54 = arith.constant 1.000000e+00 : f32
    %80 = vector.broadcast %cst_54 : f32 to vector<10x160xf32>
    %81 = arith.divf %80, %79 : vector<10x160xf32>
    %c0_55 = arith.constant 0 : index
    %c0_56 = arith.constant 0 : index
    %82 = vector.load %arg8[%c0_55, %c0_56] : memref<5x10xbf16, #tpu.memory_space<vmem>>, vector<5x10xbf16>
    %83 = arith.truncf %81 : vector<10x160xf32> to vector<10x160xbf16>
    %cst_57 = arith.constant dense<0.000000e+00> : vector<5x160xf32>
    %84 = tpu.matmul %82, %83, %cst_57 {dimension_numbers = #tpu.dot_dimension_numbers<[1], [0], [0], [1], [0, 0, 1, 1], [], []>} : vector<5x10xbf16>, vector<10x160xbf16>, vector<5x160xf32> -> vector<5x160xf32>
    %85 = arith.truncf %84 : vector<5x160xf32> to vector<5x160xbf16>
    %c0_58 = arith.constant 0 : index
    %c0_59 = arith.constant 0 : index
    %86 = vector.load %arg9[%c0_58, %c0_59] : memref<160x80xbf16, #tpu.memory_space<vmem>>, vector<160x80xbf16>
    %cst_60 = arith.constant dense<0.000000e+00> : vector<5x80xf32>
    %87 = tpu.matmul %85, %86, %cst_60 {dimension_numbers = #tpu.dot_dimension_numbers<[1], [0], [0], [1], [0, 0, 1, 1], [], []>} : vector<5x160xbf16>, vector<160x80xbf16>, vector<5x80xf32> -> vector<5x80xf32>
    %88 = arith.truncf %87 : vector<5x80xf32> to vector<5x80xbf16>
    %cst_61 = arith.constant 0.000000e+00 : f32
    %89 = vector.broadcast %cst_61 : f32 to vector<1x120xf32>
    %90 = vector.extract_strided_slice %88 {offsets = [0, 0], sizes = [1, 80], strides = [1, 1]} : vector<5x80xbf16> to vector<1x80xbf16>
    %c0_62 = arith.constant 0 : index
    %c0_63 = arith.constant 0 : index
    %c0_64 = arith.constant 0 : index
    %91 = vector.load %arg10[%c0_62, %c0_63, %c0_64] : memref<5x80x120xbf16, #tpu.memory_space<vmem>>, vector<1x80x120xbf16>
    %92 = vector.shape_cast %91 : vector<1x80x120xbf16> to vector<80x120xbf16>
    %cst_65 = arith.constant dense<0.000000e+00> : vector<1x120xf32>
    %93 = tpu.matmul %90, %92, %cst_65 {dimension_numbers = #tpu.dot_dimension_numbers<[1], [0], [0], [1], [0, 0, 1, 1], [], []>} : vector<1x80xbf16>, vector<80x120xbf16>, vector<1x120xf32> -> vector<1x120xf32>
    %94 = arith.addf %89, %93 : vector<1x120xf32>
    %95 = vector.extract_strided_slice %88 {offsets = [1, 0], sizes = [1, 80], strides = [1, 1]} : vector<5x80xbf16> to vector<1x80xbf16>
    %c1_66 = arith.constant 1 : index
    %c0_67 = arith.constant 0 : index
    %c0_68 = arith.constant 0 : index
    %96 = vector.load %arg10[%c1_66, %c0_67, %c0_68] : memref<5x80x120xbf16, #tpu.memory_space<vmem>>, vector<1x80x120xbf16>
    %97 = vector.shape_cast %96 : vector<1x80x120xbf16> to vector<80x120xbf16>
    %cst_69 = arith.constant dense<0.000000e+00> : vector<1x120xf32>
    %98 = tpu.matmul %95, %97, %cst_69 {dimension_numbers = #tpu.dot_dimension_numbers<[1], [0], [0], [1], [0, 0, 1, 1], [], []>} : vector<1x80xbf16>, vector<80x120xbf16>, vector<1x120xf32> -> vector<1x120xf32>
    %99 = arith.addf %94, %98 : vector<1x120xf32>
    %100 = vector.extract_strided_slice %88 {offsets = [2, 0], sizes = [1, 80], strides = [1, 1]} : vector<5x80xbf16> to vector<1x80xbf16>
    %c2_70 = arith.constant 2 : index
    %c0_71 = arith.constant 0 : index
    %c0_72 = arith.constant 0 : index
    %101 = vector.load %arg10[%c2_70, %c0_71, %c0_72] : memref<5x80x120xbf16, #tpu.memory_space<vmem>>, vector<1x80x120xbf16>
    %102 = vector.shape_cast %101 : vector<1x80x120xbf16> to vector<80x120xbf16>
    %cst_73 = arith.constant dense<0.000000e+00> : vector<1x120xf32>
    %103 = tpu.matmul %100, %102, %cst_73 {dimension_numbers = #tpu.dot_dimension_numbers<[1], [0], [0], [1], [0, 0, 1, 1], [], []>} : vector<1x80xbf16>, vector<80x120xbf16>, vector<1x120xf32> -> vector<1x120xf32>
    %104 = arith.addf %99, %103 : vector<1x120xf32>
    %105 = vector.extract_strided_slice %88 {offsets = [3, 0], sizes = [1, 80], strides = [1, 1]} : vector<5x80xbf16> to vector<1x80xbf16>
    %c3_74 = arith.constant 3 : index
    %c0_75 = arith.constant 0 : index
    %c0_76 = arith.constant 0 : index
    %106 = vector.load %arg10[%c3_74, %c0_75, %c0_76] : memref<5x80x120xbf16, #tpu.memory_space<vmem>>, vector<1x80x120xbf16>
    %107 = vector.shape_cast %106 : vector<1x80x120xbf16> to vector<80x120xbf16>
    %cst_77 = arith.constant dense<0.000000e+00> : vector<1x120xf32>
    %108 = tpu.matmul %105, %107, %cst_77 {dimension_numbers = #tpu.dot_dimension_numbers<[1], [0], [0], [1], [0, 0, 1, 1], [], []>} : vector<1x80xbf16>, vector<80x120xbf16>, vector<1x120xf32> -> vector<1x120xf32>
    %109 = arith.addf %104, %108 : vector<1x120xf32>
    %110 = vector.extract_strided_slice %88 {offsets = [4, 0], sizes = [1, 80], strides = [1, 1]} : vector<5x80xbf16> to vector<1x80xbf16>
    %c4_78 = arith.constant 4 : index
    %c0_79 = arith.constant 0 : index
    %c0_80 = arith.constant 0 : index
    %111 = vector.load %arg10[%c4_78, %c0_79, %c0_80] : memref<5x80x120xbf16, #tpu.memory_space<vmem>>, vector<1x80x120xbf16>
    %112 = vector.shape_cast %111 : vector<1x80x120xbf16> to vector<80x120xbf16>
    %cst_81 = arith.constant dense<0.000000e+00> : vector<1x120xf32>
    %113 = tpu.matmul %110, %112, %cst_81 {dimension_numbers = #tpu.dot_dimension_numbers<[1], [0], [0], [1], [0, 0, 1, 1], [], []>} : vector<1x80xbf16>, vector<80x120xbf16>, vector<1x120xf32> -> vector<1x120xf32>
    %114 = arith.addf %109, %113 : vector<1x120xf32>
    %c0_82 = arith.constant 0 : index
    %c0_83 = arith.constant 0 : index
    %115 = vector.load %arg11[%c0_82, %c0_83] : memref<1x120xf32, #tpu.memory_space<vmem>>, vector<1x120xf32>
    %116 = arith.addf %114, %115 : vector<1x120xf32>
    %cst_84 = arith.constant 0.000000e+00 : f32
    %117 = vector.broadcast %cst_84 : f32 to vector<1x120xf32>
    %118 = arith.subf %117, %116 : vector<1x120xf32>
    %119 = math.exp %118 : vector<1x120xf32>
    %cst_85 = arith.constant 1.000000e+00 : f32
    %120 = vector.broadcast %cst_85 : f32 to vector<1x120xf32>
    %121 = arith.addf %120, %119 : vector<1x120xf32>
    %cst_86 = arith.constant 1.000000e+00 : f32
    %122 = vector.broadcast %cst_86 : f32 to vector<1x120xf32>
    %123 = arith.divf %122, %121 : vector<1x120xf32>
    %c1_87 = arith.constant 1 : index
    %c0_88 = arith.constant 0 : index
    %c0_89 = arith.constant 0 : index
    %124 = vector.load %arg1[%c1_87, %c0_88, %c0_89] : memref<2x32x32xf32, #tpu.memory_space<vmem>>, vector<1x32x32xf32>
    %125 = vector.shape_cast %124 : vector<1x32x32xf32> to vector<32x32xf32>
    %126 = arith.truncf %125 : vector<32x32xf32> to vector<32x32xbf16>
    %cst_90 = arith.constant 0.000000e+00 : f32
    %127 = vector.broadcast %cst_90 : f32 to vector<28x168xf32>
    %128 = vector.extract_strided_slice %126 {offsets = [0, 0], sizes = [28, 32], strides = [1, 1]} : vector<32x32xbf16> to vector<28x32xbf16>
    %c0_91 = arith.constant 0 : index
    %c0_92 = arith.constant 0 : index
    %c0_93 = arith.constant 0 : index
    %129 = vector.load %arg2[%c0_91, %c0_92, %c0_93] : memref<5x32x168xbf16, #tpu.memory_space<vmem>>, vector<1x32x168xbf16>
    %130 = vector.shape_cast %129 : vector<1x32x168xbf16> to vector<32x168xbf16>
    %cst_94 = arith.constant dense<0.000000e+00> : vector<28x168xf32>
    %131 = tpu.matmul %128, %130, %cst_94 {dimension_numbers = #tpu.dot_dimension_numbers<[1], [0], [0], [1], [0, 0, 1, 1], [], []>} : vector<28x32xbf16>, vector<32x168xbf16>, vector<28x168xf32> -> vector<28x168xf32>
    %132 = arith.addf %127, %131 : vector<28x168xf32>
    %133 = vector.extract_strided_slice %126 {offsets = [1, 0], sizes = [28, 32], strides = [1, 1]} : vector<32x32xbf16> to vector<28x32xbf16>
    %c1_95 = arith.constant 1 : index
    %c0_96 = arith.constant 0 : index
    %c0_97 = arith.constant 0 : index
    %134 = vector.load %arg2[%c1_95, %c0_96, %c0_97] : memref<5x32x168xbf16, #tpu.memory_space<vmem>>, vector<1x32x168xbf16>
    %135 = vector.shape_cast %134 : vector<1x32x168xbf16> to vector<32x168xbf16>
    %cst_98 = arith.constant dense<0.000000e+00> : vector<28x168xf32>
    %136 = tpu.matmul %133, %135, %cst_98 {dimension_numbers = #tpu.dot_dimension_numbers<[1], [0], [0], [1], [0, 0, 1, 1], [], []>} : vector<28x32xbf16>, vector<32x168xbf16>, vector<28x168xf32> -> vector<28x168xf32>
    %137 = arith.addf %132, %136 : vector<28x168xf32>
    %138 = vector.extract_strided_slice %126 {offsets = [2, 0], sizes = [28, 32], strides = [1, 1]} : vector<32x32xbf16> to vector<28x32xbf16>
    %c2_99 = arith.constant 2 : index
    %c0_100 = arith.constant 0 : index
    %c0_101 = arith.constant 0 : index
    %139 = vector.load %arg2[%c2_99, %c0_100, %c0_101] : memref<5x32x168xbf16, #tpu.memory_space<vmem>>, vector<1x32x168xbf16>
    %140 = vector.shape_cast %139 : vector<1x32x168xbf16> to vector<32x168xbf16>
    %cst_102 = arith.constant dense<0.000000e+00> : vector<28x168xf32>
    %141 = tpu.matmul %138, %140, %cst_102 {dimension_numbers = #tpu.dot_dimension_numbers<[1], [0], [0], [1], [0, 0, 1, 1], [], []>} : vector<28x32xbf16>, vector<32x168xbf16>, vector<28x168xf32> -> vector<28x168xf32>
    %142 = arith.addf %137, %141 : vector<28x168xf32>
    %143 = vector.extract_strided_slice %126 {offsets = [3, 0], sizes = [28, 32], strides = [1, 1]} : vector<32x32xbf16> to vector<28x32xbf16>
    %c3_103 = arith.constant 3 : index
    %c0_104 = arith.constant 0 : index
    %c0_105 = arith.constant 0 : index
    %144 = vector.load %arg2[%c3_103, %c0_104, %c0_105] : memref<5x32x168xbf16, #tpu.memory_space<vmem>>, vector<1x32x168xbf16>
    %145 = vector.shape_cast %144 : vector<1x32x168xbf16> to vector<32x168xbf16>
    %cst_106 = arith.constant dense<0.000000e+00> : vector<28x168xf32>
    %146 = tpu.matmul %143, %145, %cst_106 {dimension_numbers = #tpu.dot_dimension_numbers<[1], [0], [0], [1], [0, 0, 1, 1], [], []>} : vector<28x32xbf16>, vector<32x168xbf16>, vector<28x168xf32> -> vector<28x168xf32>
    %147 = arith.addf %142, %146 : vector<28x168xf32>
    %148 = vector.extract_strided_slice %126 {offsets = [4, 0], sizes = [28, 32], strides = [1, 1]} : vector<32x32xbf16> to vector<28x32xbf16>
    %c4_107 = arith.constant 4 : index
    %c0_108 = arith.constant 0 : index
    %c0_109 = arith.constant 0 : index
    %149 = vector.load %arg2[%c4_107, %c0_108, %c0_109] : memref<5x32x168xbf16, #tpu.memory_space<vmem>>, vector<1x32x168xbf16>
    %150 = vector.shape_cast %149 : vector<1x32x168xbf16> to vector<32x168xbf16>
    %cst_110 = arith.constant dense<0.000000e+00> : vector<28x168xf32>
    %151 = tpu.matmul %148, %150, %cst_110 {dimension_numbers = #tpu.dot_dimension_numbers<[1], [0], [0], [1], [0, 0, 1, 1], [], []>} : vector<28x32xbf16>, vector<32x168xbf16>, vector<28x168xf32> -> vector<28x168xf32>
    %152 = arith.addf %147, %151 : vector<28x168xf32>
    %c0_111 = arith.constant 0 : index
    %c0_112 = arith.constant 0 : index
    %153 = vector.load %arg3[%c0_111, %c0_112] : memref<1x168xf32, #tpu.memory_space<vmem>>, vector<1x168xf32>
    %154 = vector.broadcast %153 : vector<1x168xf32> to vector<28x168xf32>
    %155 = arith.addf %152, %154 : vector<28x168xf32>
    %cst_113 = arith.constant 0.000000e+00 : f32
    %156 = vector.broadcast %cst_113 : f32 to vector<28x168xf32>
    %157 = arith.subf %156, %155 : vector<28x168xf32>
    %158 = math.exp %157 : vector<28x168xf32>
    %cst_114 = arith.constant 1.000000e+00 : f32
    %159 = vector.broadcast %cst_114 : f32 to vector<28x168xf32>
    %160 = arith.addf %159, %158 : vector<28x168xf32>
    %cst_115 = arith.constant 1.000000e+00 : f32
    %161 = vector.broadcast %cst_115 : f32 to vector<28x168xf32>
    %162 = arith.divf %161, %160 : vector<28x168xf32>
    %c0_116 = arith.constant 0 : index
    %c0_117 = arith.constant 0 : index
    %163 = vector.load %arg4[%c0_116, %c0_117] : memref<14x28xbf16, #tpu.memory_space<vmem>>, vector<14x28xbf16>
    %164 = arith.truncf %162 : vector<28x168xf32> to vector<28x168xbf16>
    %cst_118 = arith.constant dense<0.000000e+00> : vector<14x168xf32>
    %165 = tpu.matmul %163, %164, %cst_118 {dimension_numbers = #tpu.dot_dimension_numbers<[1], [0], [0], [1], [0, 0, 1, 1], [], []>} : vector<14x28xbf16>, vector<28x168xbf16>, vector<14x168xf32> -> vector<14x168xf32>
    %166 = arith.truncf %165 : vector<14x168xf32> to vector<14x168xbf16>
    %c0_119 = arith.constant 0 : index
    %c0_120 = arith.constant 0 : index
    %167 = vector.load %arg5[%c0_119, %c0_120] : memref<168x84xbf16, #tpu.memory_space<vmem>>, vector<168x84xbf16>
    %cst_121 = arith.constant dense<0.000000e+00> : vector<14x84xf32>
    %168 = tpu.matmul %166, %167, %cst_121 {dimension_numbers = #tpu.dot_dimension_numbers<[1], [0], [0], [1], [0, 0, 1, 1], [], []>} : vector<14x168xbf16>, vector<168x84xbf16>, vector<14x84xf32> -> vector<14x84xf32>
    %169 = arith.truncf %168 : vector<14x84xf32> to vector<14x84xbf16>
    %cst_122 = arith.constant 0.000000e+00 : f32
    %170 = vector.broadcast %cst_122 : f32 to vector<10x160xf32>
    %171 = vector.extract_strided_slice %169 {offsets = [0, 0], sizes = [10, 84], strides = [1, 1]} : vector<14x84xbf16> to vector<10x84xbf16>
    %c0_123 = arith.constant 0 : index
    %c0_124 = arith.constant 0 : index
    %c0_125 = arith.constant 0 : index
    %172 = vector.load %arg6[%c0_123, %c0_124, %c0_125] : memref<5x84x160xbf16, #tpu.memory_space<vmem>>, vector<1x84x160xbf16>
    %173 = vector.shape_cast %172 : vector<1x84x160xbf16> to vector<84x160xbf16>
    %cst_126 = arith.constant dense<0.000000e+00> : vector<10x160xf32>
    %174 = tpu.matmul %171, %173, %cst_126 {dimension_numbers = #tpu.dot_dimension_numbers<[1], [0], [0], [1], [0, 0, 1, 1], [], []>} : vector<10x84xbf16>, vector<84x160xbf16>, vector<10x160xf32> -> vector<10x160xf32>
    %175 = arith.addf %170, %174 : vector<10x160xf32>
    %176 = vector.extract_strided_slice %169 {offsets = [1, 0], sizes = [10, 84], strides = [1, 1]} : vector<14x84xbf16> to vector<10x84xbf16>
    %c1_127 = arith.constant 1 : index
    %c0_128 = arith.constant 0 : index
    %c0_129 = arith.constant 0 : index
    %177 = vector.load %arg6[%c1_127, %c0_128, %c0_129] : memref<5x84x160xbf16, #tpu.memory_space<vmem>>, vector<1x84x160xbf16>
    %178 = vector.shape_cast %177 : vector<1x84x160xbf16> to vector<84x160xbf16>
    %cst_130 = arith.constant dense<0.000000e+00> : vector<10x160xf32>
    %179 = tpu.matmul %176, %178, %cst_130 {dimension_numbers = #tpu.dot_dimension_numbers<[1], [0], [0], [1], [0, 0, 1, 1], [], []>} : vector<10x84xbf16>, vector<84x160xbf16>, vector<10x160xf32> -> vector<10x160xf32>
    %180 = arith.addf %175, %179 : vector<10x160xf32>
    %181 = vector.extract_strided_slice %169 {offsets = [2, 0], sizes = [10, 84], strides = [1, 1]} : vector<14x84xbf16> to vector<10x84xbf16>
    %c2_131 = arith.constant 2 : index
    %c0_132 = arith.constant 0 : index
    %c0_133 = arith.constant 0 : index
    %182 = vector.load %arg6[%c2_131, %c0_132, %c0_133] : memref<5x84x160xbf16, #tpu.memory_space<vmem>>, vector<1x84x160xbf16>
    %183 = vector.shape_cast %182 : vector<1x84x160xbf16> to vector<84x160xbf16>
    %cst_134 = arith.constant dense<0.000000e+00> : vector<10x160xf32>
    %184 = tpu.matmul %181, %183, %cst_134 {dimension_numbers = #tpu.dot_dimension_numbers<[1], [0], [0], [1], [0, 0, 1, 1], [], []>} : vector<10x84xbf16>, vector<84x160xbf16>, vector<10x160xf32> -> vector<10x160xf32>
    %185 = arith.addf %180, %184 : vector<10x160xf32>
    %186 = vector.extract_strided_slice %169 {offsets = [3, 0], sizes = [10, 84], strides = [1, 1]} : vector<14x84xbf16> to vector<10x84xbf16>
    %c3_135 = arith.constant 3 : index
    %c0_136 = arith.constant 0 : index
    %c0_137 = arith.constant 0 : index
    %187 = vector.load %arg6[%c3_135, %c0_136, %c0_137] : memref<5x84x160xbf16, #tpu.memory_space<vmem>>, vector<1x84x160xbf16>
    %188 = vector.shape_cast %187 : vector<1x84x160xbf16> to vector<84x160xbf16>
    %cst_138 = arith.constant dense<0.000000e+00> : vector<10x160xf32>
    %189 = tpu.matmul %186, %188, %cst_138 {dimension_numbers = #tpu.dot_dimension_numbers<[1], [0], [0], [1], [0, 0, 1, 1], [], []>} : vector<10x84xbf16>, vector<84x160xbf16>, vector<10x160xf32> -> vector<10x160xf32>
    %190 = arith.addf %185, %189 : vector<10x160xf32>
    %191 = vector.extract_strided_slice %169 {offsets = [4, 0], sizes = [10, 84], strides = [1, 1]} : vector<14x84xbf16> to vector<10x84xbf16>
    %c4_139 = arith.constant 4 : index
    %c0_140 = arith.constant 0 : index
    %c0_141 = arith.constant 0 : index
    %192 = vector.load %arg6[%c4_139, %c0_140, %c0_141] : memref<5x84x160xbf16, #tpu.memory_space<vmem>>, vector<1x84x160xbf16>
    %193 = vector.shape_cast %192 : vector<1x84x160xbf16> to vector<84x160xbf16>
    %cst_142 = arith.constant dense<0.000000e+00> : vector<10x160xf32>
    %194 = tpu.matmul %191, %193, %cst_142 {dimension_numbers = #tpu.dot_dimension_numbers<[1], [0], [0], [1], [0, 0, 1, 1], [], []>} : vector<10x84xbf16>, vector<84x160xbf16>, vector<10x160xf32> -> vector<10x160xf32>
    %195 = arith.addf %190, %194 : vector<10x160xf32>
    %c0_143 = arith.constant 0 : index
    %c0_144 = arith.constant 0 : index
    %196 = vector.load %arg7[%c0_143, %c0_144] : memref<1x160xf32, #tpu.memory_space<vmem>>, vector<1x160xf32>
    %197 = vector.broadcast %196 : vector<1x160xf32> to vector<10x160xf32>
    %198 = arith.addf %195, %197 : vector<10x160xf32>
    %cst_145 = arith.constant 0.000000e+00 : f32
    %199 = vector.broadcast %cst_145 : f32 to vector<10x160xf32>
    %200 = arith.subf %199, %198 : vector<10x160xf32>
    %201 = math.exp %200 : vector<10x160xf32>
    %cst_146 = arith.constant 1.000000e+00 : f32
    %202 = vector.broadcast %cst_146 : f32 to vector<10x160xf32>
    %203 = arith.addf %202, %201 : vector<10x160xf32>
    %cst_147 = arith.constant 1.000000e+00 : f32
    %204 = vector.broadcast %cst_147 : f32 to vector<10x160xf32>
    %205 = arith.divf %204, %203 : vector<10x160xf32>
    %c0_148 = arith.constant 0 : index
    %c0_149 = arith.constant 0 : index
    %206 = vector.load %arg8[%c0_148, %c0_149] : memref<5x10xbf16, #tpu.memory_space<vmem>>, vector<5x10xbf16>
    %207 = arith.truncf %205 : vector<10x160xf32> to vector<10x160xbf16>
    %cst_150 = arith.constant dense<0.000000e+00> : vector<5x160xf32>
    %208 = tpu.matmul %206, %207, %cst_150 {dimension_numbers = #tpu.dot_dimension_numbers<[1], [0], [0], [1], [0, 0, 1, 1], [], []>} : vector<5x10xbf16>, vector<10x160xbf16>, vector<5x160xf32> -> vector<5x160xf32>
    %209 = arith.truncf %208 : vector<5x160xf32> to vector<5x160xbf16>
    %c0_151 = arith.constant 0 : index
    %c0_152 = arith.constant 0 : index
    %210 = vector.load %arg9[%c0_151, %c0_152] : memref<160x80xbf16, #tpu.memory_space<vmem>>, vector<160x80xbf16>
    %cst_153 = arith.constant dense<0.000000e+00> : vector<5x80xf32>
    %211 = tpu.matmul %209, %210, %cst_153 {dimension_numbers = #tpu.dot_dimension_numbers<[1], [0], [0], [1], [0, 0, 1, 1], [], []>} : vector<5x160xbf16>, vector<160x80xbf16>, vector<5x80xf32> -> vector<5x80xf32>
    %212 = arith.truncf %211 : vector<5x80xf32> to vector<5x80xbf16>
    %cst_154 = arith.constant 0.000000e+00 : f32
    %213 = vector.broadcast %cst_154 : f32 to vector<1x120xf32>
    %214 = vector.extract_strided_slice %212 {offsets = [0, 0], sizes = [1, 80], strides = [1, 1]} : vector<5x80xbf16> to vector<1x80xbf16>
    %c0_155 = arith.constant 0 : index
    %c0_156 = arith.constant 0 : index
    %c0_157 = arith.constant 0 : index
    %215 = vector.load %arg10[%c0_155, %c0_156, %c0_157] : memref<5x80x120xbf16, #tpu.memory_space<vmem>>, vector<1x80x120xbf16>
    %216 = vector.shape_cast %215 : vector<1x80x120xbf16> to vector<80x120xbf16>
    %cst_158 = arith.constant dense<0.000000e+00> : vector<1x120xf32>
    %217 = tpu.matmul %214, %216, %cst_158 {dimension_numbers = #tpu.dot_dimension_numbers<[1], [0], [0], [1], [0, 0, 1, 1], [], []>} : vector<1x80xbf16>, vector<80x120xbf16>, vector<1x120xf32> -> vector<1x120xf32>
    %218 = arith.addf %213, %217 : vector<1x120xf32>
    %219 = vector.extract_strided_slice %212 {offsets = [1, 0], sizes = [1, 80], strides = [1, 1]} : vector<5x80xbf16> to vector<1x80xbf16>
    %c1_159 = arith.constant 1 : index
    %c0_160 = arith.constant 0 : index
    %c0_161 = arith.constant 0 : index
    %220 = vector.load %arg10[%c1_159, %c0_160, %c0_161] : memref<5x80x120xbf16, #tpu.memory_space<vmem>>, vector<1x80x120xbf16>
    %221 = vector.shape_cast %220 : vector<1x80x120xbf16> to vector<80x120xbf16>
    %cst_162 = arith.constant dense<0.000000e+00> : vector<1x120xf32>
    %222 = tpu.matmul %219, %221, %cst_162 {dimension_numbers = #tpu.dot_dimension_numbers<[1], [0], [0], [1], [0, 0, 1, 1], [], []>} : vector<1x80xbf16>, vector<80x120xbf16>, vector<1x120xf32> -> vector<1x120xf32>
    %223 = arith.addf %218, %222 : vector<1x120xf32>
    %224 = vector.extract_strided_slice %212 {offsets = [2, 0], sizes = [1, 80], strides = [1, 1]} : vector<5x80xbf16> to vector<1x80xbf16>
    %c2_163 = arith.constant 2 : index
    %c0_164 = arith.constant 0 : index
    %c0_165 = arith.constant 0 : index
    %225 = vector.load %arg10[%c2_163, %c0_164, %c0_165] : memref<5x80x120xbf16, #tpu.memory_space<vmem>>, vector<1x80x120xbf16>
    %226 = vector.shape_cast %225 : vector<1x80x120xbf16> to vector<80x120xbf16>
    %cst_166 = arith.constant dense<0.000000e+00> : vector<1x120xf32>
    %227 = tpu.matmul %224, %226, %cst_166 {dimension_numbers = #tpu.dot_dimension_numbers<[1], [0], [0], [1], [0, 0, 1, 1], [], []>} : vector<1x80xbf16>, vector<80x120xbf16>, vector<1x120xf32> -> vector<1x120xf32>
    %228 = arith.addf %223, %227 : vector<1x120xf32>
    %229 = vector.extract_strided_slice %212 {offsets = [3, 0], sizes = [1, 80], strides = [1, 1]} : vector<5x80xbf16> to vector<1x80xbf16>
    %c3_167 = arith.constant 3 : index
    %c0_168 = arith.constant 0 : index
    %c0_169 = arith.constant 0 : index
    %230 = vector.load %arg10[%c3_167, %c0_168, %c0_169] : memref<5x80x120xbf16, #tpu.memory_space<vmem>>, vector<1x80x120xbf16>
    %231 = vector.shape_cast %230 : vector<1x80x120xbf16> to vector<80x120xbf16>
    %cst_170 = arith.constant dense<0.000000e+00> : vector<1x120xf32>
    %232 = tpu.matmul %229, %231, %cst_170 {dimension_numbers = #tpu.dot_dimension_numbers<[1], [0], [0], [1], [0, 0, 1, 1], [], []>} : vector<1x80xbf16>, vector<80x120xbf16>, vector<1x120xf32> -> vector<1x120xf32>
    %233 = arith.addf %228, %232 : vector<1x120xf32>
    %234 = vector.extract_strided_slice %212 {offsets = [4, 0], sizes = [1, 80], strides = [1, 1]} : vector<5x80xbf16> to vector<1x80xbf16>
    %c4_171 = arith.constant 4 : index
    %c0_172 = arith.constant 0 : index
    %c0_173 = arith.constant 0 : index
    %235 = vector.load %arg10[%c4_171, %c0_172, %c0_173] : memref<5x80x120xbf16, #tpu.memory_space<vmem>>, vector<1x80x120xbf16>
    %236 = vector.shape_cast %235 : vector<1x80x120xbf16> to vector<80x120xbf16>
    %cst_174 = arith.constant dense<0.000000e+00> : vector<1x120xf32>
    %237 = tpu.matmul %234, %236, %cst_174 {dimension_numbers = #tpu.dot_dimension_numbers<[1], [0], [0], [1], [0, 0, 1, 1], [], []>} : vector<1x80xbf16>, vector<80x120xbf16>, vector<1x120xf32> -> vector<1x120xf32>
    %238 = arith.addf %233, %237 : vector<1x120xf32>
    %c0_175 = arith.constant 0 : index
    %c0_176 = arith.constant 0 : index
    %239 = vector.load %arg11[%c0_175, %c0_176] : memref<1x120xf32, #tpu.memory_space<vmem>>, vector<1x120xf32>
    %240 = arith.addf %238, %239 : vector<1x120xf32>
    %cst_177 = arith.constant 0.000000e+00 : f32
    %241 = vector.broadcast %cst_177 : f32 to vector<1x120xf32>
    %242 = arith.subf %241, %240 : vector<1x120xf32>
    %243 = math.exp %242 : vector<1x120xf32>
    %cst_178 = arith.constant 1.000000e+00 : f32
    %244 = vector.broadcast %cst_178 : f32 to vector<1x120xf32>
    %245 = arith.addf %244, %243 : vector<1x120xf32>
    %cst_179 = arith.constant 1.000000e+00 : f32
    %246 = vector.broadcast %cst_179 : f32 to vector<1x120xf32>
    %247 = arith.divf %246, %245 : vector<1x120xf32>
    %248 = tpu.concatenate %123, %247 in 0 : vector<1x120xf32>, vector<1x120xf32> -> vector<2x120xf32>
    %249 = arith.truncf %248 : vector<2x120xf32> to vector<2x120xbf16>
    %c0_180 = arith.constant 0 : index
    %c0_181 = arith.constant 0 : index
    %250 = vector.load %arg12[%c0_180, %c0_181] : memref<120x84xbf16, #tpu.memory_space<vmem>>, vector<120x84xbf16>
    %cst_182 = arith.constant dense<0.000000e+00> : vector<2x84xf32>
    %251 = tpu.matmul %249, %250, %cst_182 {dimension_numbers = #tpu.dot_dimension_numbers<[1], [0], [0], [1], [0, 0, 1, 1], [], []>} : vector<2x120xbf16>, vector<120x84xbf16>, vector<2x84xf32> -> vector<2x84xf32>
    %c0_183 = arith.constant 0 : index
    %c0_184 = arith.constant 0 : index
    %252 = vector.load %arg13[%c0_183, %c0_184] : memref<1x84xf32, #tpu.memory_space<vmem>>, vector<1x84xf32>
    %253 = vector.broadcast %252 : vector<1x84xf32> to vector<2x84xf32>
    %254 = arith.addf %251, %253 : vector<2x84xf32>
    %255 = math.tanh %254 : vector<2x84xf32>
    %256 = arith.truncf %255 : vector<2x84xf32> to vector<2x84xbf16>
    %c0_185 = arith.constant 0 : index
    %c0_186 = arith.constant 0 : index
    %257 = vector.load %arg14[%c0_185, %c0_186] : memref<84x128xbf16, #tpu.memory_space<vmem>>, vector<84x128xbf16>
    %cst_187 = arith.constant dense<0.000000e+00> : vector<2x128xf32>
    %258 = tpu.matmul %256, %257, %cst_187 {dimension_numbers = #tpu.dot_dimension_numbers<[1], [0], [0], [1], [0, 0, 1, 1], [], []>} : vector<2x84xbf16>, vector<84x128xbf16>, vector<2x128xf32> -> vector<2x128xf32>
    %c0_188 = arith.constant 0 : index
    %c0_189 = arith.constant 0 : index
    %259 = vector.load %arg15[%c0_188, %c0_189] : memref<1x128xf32, #tpu.memory_space<vmem>>, vector<1x128xf32>
    %260 = vector.broadcast %259 : vector<1x128xf32> to vector<2x128xf32>
    %261 = arith.addf %258, %260 : vector<2x128xf32>
    %c0_190 = arith.constant 0 : index
    %c0_191 = arith.constant 0 : index
    %262 = vector.load %arg16[%c0_190, %c0_191] : memref<2x128xf32, #tpu.memory_space<vmem>>, vector<2x128xf32>
    tpu.vector_store %arg16[%c0_190, %c0_191], %261 {strides = array<i32>} : memref<2x128xf32, #tpu.memory_space<vmem>>, vector<2x128xf32>,
    return
  }
  func.func @transform_0(%arg0: i32) -> (i32, i32, i32) {
    %c0_i32 = arith.constant 0 : i32
    %c0_i32_0 = arith.constant 0 : i32
    %c0_i32_1 = arith.constant 0 : i32
    return %arg0, %c0_i32, %c0_i32_0 : i32, i32, i32
  }
  func.func @transform_1(%arg0: i32) -> (i32, i32, i32) {
    %c0_i32 = arith.constant 0 : i32
    %c0_i32_0 = arith.constant 0 : i32
    %c0_i32_1 = arith.constant 0 : i32
    %c0_i32_2 = arith.constant 0 : i32
    return %c0_i32, %c0_i32_0, %c0_i32_1 : i32, i32, i32
  }
  func.func @transform_2(%arg0: i32) -> (i32, i32) {
    %c0_i32 = arith.constant 0 : i32
    %c0_i32_0 = arith.constant 0 : i32
    %c0_i32_1 = arith.constant 0 : i32
    return %c0_i32, %c0_i32_0 : i32, i32
  }
  func.func @transform_3(%arg0: i32) -> (i32, i32) {
    %c0_i32 = arith.constant 0 : i32
    %c0_i32_0 = arith.constant 0 : i32
    %c0_i32_1 = arith.constant 0 : i32
    return %c0_i32, %c0_i32_0 : i32, i32
  }
  func.func @transform_4(%arg0: i32) -> (i32, i32) {
    %c0_i32 = arith.constant 0 : i32
    %c0_i32_0 = arith.constant 0 : i32
    %c0_i32_1 = arith.constant 0 : i32
    return %c0_i32, %c0_i32_0 : i32, i32
  }
  func.func @transform_5(%arg0: i32) -> (i32, i32, i32) {
    %c0_i32 = arith.constant 0 : i32
    %c0_i32_0 = arith.constant 0 : i32
    %c0_i32_1 = arith.constant 0 : i32
    %c0_i32_2 = arith.constant 0 : i32
    return %c0_i32, %c0_i32_0, %c0_i32_1 : i32, i32, i32
  }
  func.func @transform_6(%arg0: i32) -> (i32, i32) {
    %c0_i32 = arith.constant 0 : i32
    %c0_i32_0 = arith.constant 0 : i32
    %c0_i32_1 = arith.constant 0 : i32
    return %c0_i32, %c0_i32_0 : i32, i32
  }
  func.func @transform_7(%arg0: i32) -> (i32, i32) {
    %c0_i32 = arith.constant 0 : i32
    %c0_i32_0 = arith.constant 0 : i32
    %c0_i32_1 = arith.constant 0 : i32
    return %c0_i32, %c0_i32_0 : i32, i32
  }
  func.func @transform_8(%arg0: i32) -> (i32, i32) {
    %c0_i32 = arith.constant 0 : i32
    %c0_i32_0 = arith.constant 0 : i32
    %c0_i32_1 = arith.constant 0 : i32
    return %c0_i32, %c0_i32_0 : i32, i32
  }
  func.func @transform_9(%arg0: i32) -> (i32, i32, i32) {
    %c0_i32 = arith.constant 0 : i32
    %c0_i32_0 = arith.constant 0 : i32
    %c0_i32_1 = arith.constant 0 : i32
    %c0_i32_2 = arith.constant 0 : i32
    return %c0_i32, %c0_i32_0, %c0_i32_1 : i32, i32, i32
  }
  func.func @transform_10(%arg0: i32) -> (i32, i32) {
    %c0_i32 = arith.constant 0 : i32
    %c0_i32_0 = arith.constant 0 : i32
    %c0_i32_1 = arith.constant 0 : i32
    return %c0_i32, %c0_i32_0 : i32, i32
  }
  func.func @transform_11(%arg0: i32) -> (i32, i32) {
    %c0_i32 = arith.constant 0 : i32
    %c0_i32_0 = arith.constant 0 : i32
    %c0_i32_1 = arith.constant 0 : i32
    return %c0_i32, %c0_i32_0 : i32, i32
  }
  func.func @transform_12(%arg0: i32) -> (i32, i32) {
    %c0_i32 = arith.constant 0 : i32
    %c0_i32_0 = arith.constant 0 : i32
    %c0_i32_1 = arith.constant 0 : i32
    return %c0_i32, %c0_i32_0 : i32, i32
  }
  func.func @transform_13(%arg0: i32) -> (i32, i32) {
    %c0_i32 = arith.constant 0 : i32
    %c0_i32_0 = arith.constant 0 : i32
    %c0_i32_1 = arith.constant 0 : i32
    return %c0_i32, %c0_i32_0 : i32, i32
  }
  func.func @transform_14(%arg0: i32) -> (i32, i32) {
    %c0_i32 = arith.constant 0 : i32
    %c0_i32_0 = arith.constant 0 : i32
    %c0_i32_1 = arith.constant 0 : i32
    return %c0_i32, %c0_i32_0 : i32, i32
  }
  func.func @transform_15(%arg0: i32) -> (i32, i32) {
    %c0_i32 = arith.constant 0 : i32
    %c0_i32_0 = arith.constant 0 : i32
    return %arg0, %c0_i32 : i32, i32
  }
}

</mosaic_0001>

<bundles_post_ra>
// kernel: lenet_forward.1
= control target key start
LH: loop header
LB: loop body
LE: loop exit
PB: predicated region body
PF: predicated region fallthrough
CT: control target
= control target key end

     0   :  { %v5840_v2 = vmov 0   ;;  %vm67_vm0 = vsmask.f32 7424  ;;  %vm103_vm1 = vcmask 261120   ;;  %vm443_vm2 = vcmask 1045504   ;;  %s5824_s0 = inlined_call_operand.vmem [shape: f32[2,32,32], index: 0, kind: input, shape index: {}]   ;;  %s5825_s1 = inlined_call_operand.vmem [shape: bf16[5,32,168], index: 1, kind: input, shape index: {}]   ;;  %s5826_s2 = inlined_call_operand.vmem [shape: f32[1,168], index: 2, kind: input, shape index: {}]   ;;  %s5827_s3 = inlined_call_operand.vmem [shape: bf16[14,28], index: 3, kind: input, shape index: {}]   ;;  %s5828_s4 = inlined_call_operand.vmem [shape: bf16[168,84], index: 4, kind: input, shape index: {}]   ;;  %s5829_s5 = inlined_call_operand.vmem [shape: bf16[5,84,160], index: 5, kind: input, shape index: {}]   ;;  %s5830_s6 = inlined_call_operand.vmem [shape: f32[1,160], index: 6, kind: input, shape index: {}]   ;;  %s5831_s7 = inlined_call_operand.vmem [shape: bf16[5,10], index: 7, kind: input, shape index: {}]   ;;  %s5832_s8 = inlined_call_operand.vmem [shape: bf16[160,80], index: 8, kind: input, shape index: {}]   ;;  %s5833_s9 = inlined_call_operand.vmem [shape: bf16[5,80,120], index: 9, kind: input, shape index: {}]   ;;  %s5834_s10 = inlined_call_operand.vmem [shape: f32[1,120], index: 10, kind: input, shape index: {}]   ;;  %s5835_s11 = inlined_call_operand.vmem [shape: bf16[120,84], index: 11, kind: input, shape index: {}]   ;;  %s5836_s12 = inlined_call_operand.vmem [shape: f32[1,84], index: 12, kind: input, shape index: {}]   ;;  %s5837_s13 = inlined_call_operand.vmem [shape: bf16[84,128], index: 13, kind: input, shape index: {}]   ;;  %s5838_s14 = inlined_call_operand.vmem [shape: f32[1,128], index: 14, kind: input, shape index: {}]   ;;  %s5839_s15 = inlined_call_operand.hbm [shape: f32[2,128], index: 15, kind: output, shape index: {}]  }
   0x1   :  { %v4096_v0 = vld [vmem:[%s5825_s1 + $0x24] ss:$8 sps:$4 sm:$0xff]   ;;  %v4098_v1 = vld [vmem:[%s5825_s1 + $0x20] ss:$8 sps:$4 sm:$0xff]   ;;  %142 = vmatprep.mubr.bf16.mxu0 %v5840_v2  ;;  %656 = vmatprep.mubr.bf16.mxu1 %v5840_v2  ;;  %v4099_v3 = vld [vmem:[%s5825_s1 + $0x34] ss:$8 sps:$4 sm:$0xff]  }
   0x2   :  { %110 = vmatprep.subr.bf16.mxu0 %v4096_v0  ;;  %v4101_v4 = vld [vmem:[%s5825_s1 + $0x30] ss:$8 sps:$4 sm:$0xff]   ;;  %v52_v5 = vld [vmem:[%s5824_s0] sm:$0xff]  ;;  %v53_v6 = vld [vmem:[%s5824_s0 + $0x8] sm:$0xff]  ;;  %vm247_vm3 = vcmask 1046528  }
   0x3   :  { %111 = vmatpush1.bf16.msra.mxu0 %v4098_v1  ;;  %v54_v7 = vld [vmem:[%s5824_s0 + $0x10] sm:$0xff]  ;;  %v55_v8 = vld [vmem:[%s5824_s0 + $0x18] sm:$0xff]  ;;  %v56_v9 = vpack.c.bf16 %v53_v6, %v52_v5  ;;  %v4104_v11 = vld [vmem:[%s5825_s1 + $0x4] ss:$8 sps:$4 sm:$0xff]   ;;  %vm343_vm4 = vsmask.f32 6400 }
   0x4   :  { %112 = vmatprep.subr.bf16.mxu0 %v4099_v3  ;;  %v4568_v10 = vpack.c.bf16 %v55_v8, %v54_v7  ;;  %v4102_v18 = vld [vmem:[%s5825_s1] ss:$8 sps:$4 sm:$0xff]   ;;  %v4107_v20 = vld [vmem:[%s5825_s1 + $0x14] ss:$8 sps:$4 sm:$0xff]   ;;  %v4105_v25 = vld [vmem:[%s5825_s1 + $0x10] ss:$8 sps:$4 sm:$0xff]  }
   0x5   :  { %v69_v12 = vshrl.u32 %v56_v9, 16  ;;  %v71_v13 = vshll.u32 %v56_v9, 16  ;;  %v444_v19 = vrot.slane %v56_v9, 2  ;;  %v4110_v26 = vld [vmem:[%s5825_s1 + $0x44] ss:$8 sps:$4 sm:$0xff]   ;;  %v248_v32 = vrot.slane %v56_v9, 1 }
   0x6   :  { %v76_v14 = vshll.u32 %v4568_v10, 16  ;;  %v445_v21 = vrot.slane %v4568_v10, 2  ;;  %v80_v23 = vshrl.u32 %v4568_v10, 16  ;;  %v4108_v28 = vld [vmem:[%s5825_s1 + $0x40] ss:$8 sps:$4 sm:$0xff]   ;;  %v249_v33 = vrot.slane %v4568_v10, 1 }
   0x7   :  { %113 = vmatpush1.bf16.msra.mxu0 %v4101_v4  ;;  %v73_v15 = vrot.slane %v71_v13, 1  ;;  %v4113_v29 = vld [vmem:[%s5825_s1 + $0x54] ss:$8 sps:$4 sm:$0xff]   ;;  %v4111_v30 = vld [vmem:[%s5825_s1 + $0x50] ss:$8 sps:$4 sm:$0xff]   ;;  %v344_v34 = vrot.slane %v69_v12, 1 }
   0x8   :  { %v78_v16 = vrot.slane %v76_v14, 1  ;;  %187 = vmatprep.subr.bf16.mxu0 %v4104_v11  ;;  %v446_v24 = vsel %vm443_vm2, %v444_v19, %v445_v21  ;;  %v4116_v31 = vld [vmem:[%s5825_s1 + $0x64] ss:$8 sps:$4 sm:$0xff]   ;;  %v345_v35 = vrot.slane %v71_v13, 2  ;;  %v348_v36 = vrot.slane %v76_v14, 2 }
   0x9   :  { %v74_v17 = vor.u32 %v73_v15, %v69_v12  ;;  %v347_v37 = vrot.slane %v80_v23, 1  ;;  %v4114_v38 = vld [vmem:[%s5825_s1 + $0x60] ss:$8 sps:$4 sm:$0xff]   ;;  %v4119_v39 = vld [vmem:[%s5825_s1 + $0x74] ss:$8 sps:$4 sm:$0xff]   ;;  %v250_v40 = vsel %vm247_vm3, %v248_v32, %v249_v33 }
   0xa   :  { %v82_v27 = vor.u32 %v80_v23, %v78_v16  ;;  %v4117_v41 = vld [vmem:[%s5825_s1 + $0x70] ss:$8 sps:$4 sm:$0xff]   ;;  %v4122_v42 = vld [vmem:[%s5825_s1 + $0x84] ss:$8 sps:$4 sm:$0xff]   ;;  %v346_v43 = vor.u32 %v345_v35, %v344_v34  ;;  %v4120_v45 = vld [vmem:[%s5825_s1 + $0x80] ss:$8 sps:$4 sm:$0xff]  }
   0xb   :  { %v79_v22 = vsel %vm67_vm0, %v74_v17, %v78_v16  ;;  %v349_v44 = vor.u32 %v348_v36, %v347_v37  ;;  %v4125_v46 = vld [vmem:[%s5825_s1 + $0x94] ss:$8 sps:$4 sm:$0xff]   ;;  %v4123_v48 = vld [vmem:[%s5825_s1 + $0x90] ss:$8 sps:$4 sm:$0xff]  }
   0xc   :  { %3441 = vmatmul.mubr.msk.bf16.vlgmr.msra.gmra.mrb[0].mxu0 %vm103_vm1, %v79_v22 }
   0xd   :  { %152 = vmatprep.mubr.bf16.mxu0 %v5840_v2  ;;  %188 = vmatpush1.bf16.msra.mxu0 %v4102_v18  ;;  %v350_v47 = vsel %vm343_vm4, %v346_v43, %v349_v44 }
   0xe   :  { %189 = vmatprep.subr.bf16.mxu0 %v4107_v20 }
  0x11   :  { %190 = vmatpush1.bf16.msra.mxu0 %v4105_v25 }
  0x12   :  { %277 = vmatprep.subr.bf16.mxu0 %v4110_v26 }
  0x14   :  { %3442 = vmatmul.mubr.msk.bf16.gmra.mrb[4].mxu0 %vm103_vm1, %v82_v27 }
  0x15   :  { %219 = vmatprep.mubr.bf16.mxu0 %v5840_v2 }
  0x1c   :  { %3447 = vmatmul.mubr.msk.bf16.vlgmr.msra.gmra.mrb[0].mxu0 %vm103_vm1, %v56_v9 }
  0x1d   :  { %229 = vmatprep.mubr.bf16.mxu0 %v5840_v2  ;;  %278 = vmatpush1.bf16.msra.mxu0 %v4108_v28 }
  0x1e   :  { %279 = vmatprep.subr.bf16.mxu0 %v4113_v29 }
  0x21   :  { %280 = vmatpush1.bf16.msra.mxu0 %v4111_v30 }
  0x22   :  { %377 = vmatprep.subr.bf16.mxu0 %v4116_v31 }
  0x24   :  { %3448 = vmatmul.mubr.msk.bf16.gmra.mrb[4].mxu0 %vm103_vm1, %v4568_v10 }
  0x25   :  { %309 = vmatprep.mubr.bf16.mxu0 %v5840_v2 }
  0x2c   :  { %3457 = vmatmul.mubr.msk.bf16.vlgmr.msra.gmra.mrb[0].mxu0 %vm103_vm1, %v250_v40 }
  0x2d   :  { %319 = vmatprep.mubr.bf16.mxu0 %v5840_v2  ;;  %378 = vmatpush1.bf16.msra.mxu0 %v4114_v38 }
  0x2e   :  { %379 = vmatprep.subr.bf16.mxu0 %v4119_v39 }
  0x31   :  { %380 = vmatpush1.bf16.msra.mxu0 %v4117_v41 }
  0x32   :  { %473 = vmatprep.subr.bf16.mxu0 %v4122_v42 }
  0x34   :  { %3458 = vmatmul.mubr.msk.bf16.gmra.mrb[4].mxu0 %vm103_vm1, %v249_v33 }
  0x35   :  { %409 = vmatprep.mubr.bf16.mxu0 %v5840_v2 }
  0x3c   :  { %3467 = vmatmul.mubr.msk.bf16.vlgmr.msra.gmra.mrb[0].mxu0 %vm103_vm1, %v350_v47 }
  0x3d   :  { %419 = vmatprep.mubr.bf16.mxu0 %v5840_v2  ;;  %474 = vmatpush1.bf16.msra.mxu0 %v4120_v45 }
  0x3e   :  { %475 = vmatprep.subr.bf16.mxu0 %v4125_v46 }
  0x41   :  { %476 = vmatpush1.bf16.msra.mxu0 %v4123_v48 }
  0x44   :  { %3468 = vmatmul.mubr.msk.bf16.gmra.mrb[4].mxu0 %vm103_vm1, %v349_v44 }
  0x45   :  { %505 = vmatprep.mubr.bf16.mxu0 %v5840_v2 }
  0x46   :  { %20 = vsyncpa [#allocation3], 0  ;;  %v536_v49 = vlaneseq  ;;  %v534_v52 = vld [vmem:[%s5826_s2] sm:$0x3]  ;;  %vm613_vm5 = vcmask 228352   ;;  %vm757_vm6 = vcmask 1043456  }
  0x47   :  { %vm753_vm7 = vcmask 326656   ;;  %vm892_vm8 = vcmask 1041408   ;;  %vm888_vm9 = vcmask 687104   ;;  %vm1470_vm10 = vcmask 1044480  }
  0x48   :  { %v4651_v50 = vshrl.u32 %v536_v49, 7  ;;  %vm1466_vm11 = vcmask 80896   ;;  %vm4460_vm12 = vmmov 0   ;;  %vm1698_vm13 = vcmask 654336  }
  0x49   :  { %vm3202_vm14 = vcmask 1040384   ;;  %vm3272_vm15 = vcmask 982016  }
  0x4a   :  { %v538_v51 = vsub.s32 0, %v4651_v50  ;;  %v542_v53 = vsub.s32 1, %v4651_v50 }
  0x4c   :  { %3477 = vmatmul.mubr.msk.bf16.vlgmr.msra.gmra.mrb[0].mxu0 %vm103_vm1, %v446_v24  ;;  %v4660_v54 = vrot.slane %v534_v52, %v538_v51  ;;  %v4664_v55 = vrot.slane %v534_v52, %v542_v53 }
  0x4d   :  { %515 = vmatprep.mubr.bf16.mxu0 %v5840_v2 }
  0x54   :  { %3478 = vmatmul.mubr.msk.bf16.gmra.mrb[4].mxu0 %vm103_vm1, %v445_v21 }
  0x55   :  { %1509 = vmatprep.mubr.bf16.mxu0 %v5840_v2 }
 0x11f   :  { %v507_v56 = vpop.f32.mrb[0].mxu0 }
 0x120   :  { %v546_v57 = vadd.f32 %v4660_v54, %v507_v56  ;;  %v509_v58 = vpop.f32.mrb[1].mxu0 }
 0x121   :  { %v547_v59 = vadd.f32 %v4664_v55, %v509_v58  ;;  %v511_v60 = vpop.f32.mrb[2].mxu0 }
 0x122   :  { %v554_v61 = vsub.f32 0.0, %v546_v57  ;;  %v548_v62 = vadd.f32 %v4660_v54, %v511_v60  ;;  %v513_v63 = vpop.f32.mrb[3].mxu0  ;;  %v4127_v60 = vld [vmem:[%s5828_s4] sm:$0xff]  }
 0x123   :  { %v555_v0 = vsub.f32 0.0, %v547_v59  ;;  %v549_v1 = vadd.f32 %v4664_v55, %v513_v63  ;;  %v4126_v59 = vld [vmem:[%s5827_s3] sm:$0x7f]   ;;  %v4130_v63 = vld [vmem:[%s5828_s4 + $0x18] sm:$0xff]  }
 0x124   :  { %v562_v3 = vmul.f32 1.442695, %v554_v61  ;;  %v556_v4 = vsub.f32 0.0, %v548_v62  ;;  %v4128_v61 = vld [vmem:[%s5828_s4 + $0x8] sm:$0xff]   ;;  %v4129_v62 = vld [vmem:[%s5828_s4 + $0x10] sm:$0xff]  }
 0x125   :  { %v564_v5 = vmul.f32 1.442695, %v555_v0  ;;  %v557_v6 = vsub.f32 0.0, %v549_v1  ;;  %v4131_v0 = vld [vmem:[%s5828_s4 + $0x20] sm:$0xff]   ;;  %v4132_v1 = vld [vmem:[%s5828_s4 + $0x28] sm:$0xff]  }
 0x126   :  { %4272 = vpow2.f32 %v562_v3  ;;  %v566_v7 = vmul.f32 1.442695, %v556_v4  ;;  %v4133_v3 = vld [vmem:[%s5828_s4 + $0x30] sm:$0xff]   ;;  %v4134_v4 = vld [vmem:[%s5828_s4 + $0x38] sm:$0xff]  }
 0x127   :  { %4274 = vpow2.f32 %v564_v5  ;;  %v568_v8 = vmul.f32 1.442695, %v557_v6  ;;  %v517_v9 = vpop.f32.mrb[4].mxu0  ;;  %v4135_v5 = vld [vmem:[%s5828_s4 + $0x40] sm:$0xff]   ;;  %v4136_v6 = vld [vmem:[%s5828_s4 + $0x48] sm:$0xff]  }
 0x128   :  { %4276 = vpow2.f32 %v566_v7  ;;  %v550_v10 = vadd.f32 %v4660_v54, %v517_v9  ;;  %v519_v11 = vpop.f32.mrb[5].mxu0  ;;  %v4137_v7 = vld [vmem:[%s5828_s4 + $0x50] ss:$0 sps:$4 sm:$0xff]   ;;  %v4140_v9 = vld [vmem:[%s5829_s5 + $0x5c] ss:$8 sps:$4 sm:$0xff]  }
 0x129   :  { %4278 = vpow2.f32 %v568_v8  ;;  %v551_v12 = vadd.f32 %v4664_v55, %v519_v11  ;;  %v521_v13 = vpop.f32.mrb[6].mxu0  ;;  %v4725_v8 = vsel %vm757_vm6, %v4137_v7, 0  ;;  %v4871_v7 = vld [vmem:[%s5829_s5 + $0xf0] ss:$8 sps:$4 sm:$0xff]  }
 0x12a   :  { %v558_v14 = vsub.f32 0.0, %v550_v10  ;;  %v552_v15 = vadd.f32 %v4660_v54, %v521_v13  ;;  %v523_v16 = vpop.f32.mrb[7].mxu0 }
 0x12b   :  { %v559_v17 = vsub.f32 0.0, %v551_v12  ;;  %v553_v18 = vadd.f32 %v4664_v55, %v523_v16  ;;  %v4138_v16 = vld [vmem:[%s5829_s5 + $0x58] ss:$8 sps:$4 sm:$0xff]  }
 0x12c   :  { %v570_v19 = vmul.f32 1.442695, %v558_v14  ;;  %v560_v20 = vsub.f32 0.0, %v552_v15 }
 0x12d   :  { %v572_v21 = vmul.f32 1.442695, %v559_v17  ;;  %v561_v22 = vsub.f32 0.0, %v553_v18  ;;  %v4143_v17 = vld [vmem:[%s5829_s5 + $0x6c] ss:$8 sps:$4 sm:$0xff]  }
 0x12e   :  { %4280 = vpow2.f32 %v570_v19  ;;  %v574_v23 = vmul.f32 1.442695, %v560_v20  ;;  %v4141_v18 = vld [vmem:[%s5829_s5 + $0x68] ss:$8 sps:$4 sm:$0xff]   ;;  %v4146_v19 = vld [vmem:[%s5829_s5 + $0x7c] ss:$8 sps:$4 sm:$0xff]  }
 0x12f   :  { %4282 = vpow2.f32 %v572_v21  ;;  %v576_v24 = vmul.f32 1.442695, %v561_v22  ;;  %v4144_v20 = vld [vmem:[%s5829_s5 + $0x78] ss:$8 sps:$4 sm:$0xff]   ;;  %v4149_v21 = vld [vmem:[%s5829_s5 + $0x8c] ss:$8 sps:$4 sm:$0xff]  }
 0x130   :  { %v4273_v25 = vpop.eup %4272  ;;  %4284 = vpow2.f32 %v574_v23  ;;  %v4147_v22 = vld [vmem:[%s5829_s5 + $0x88] ss:$8 sps:$4 sm:$0xff]   ;;  %v4152_v23 = vld [vmem:[%s5829_s5 + $0x9c] ss:$8 sps:$4 sm:$0xff]  }
 0x131   :  { %v4275_v26 = vpop.eup %4274  ;;  %v578_v27 = vadd.f32 1.0, %v4273_v25  ;;  %4286 = vpow2.f32 %v576_v24  ;;  %v4150_v24 = vld [vmem:[%s5829_s5 + $0x98] ss:$8 sps:$4 sm:$0xff]   ;;  %v3504_v25 = vld [vmem:[%s5829_s5 + $0xa8] sm:$0x33] }
 0x132   :  { %v4277_v28 = vpop.eup %4276  ;;  %v579_v29 = vadd.f32 1.0, %v4275_v26  ;;  %v4763_v26 = vcombine.high %v3504_v25, %v3504_v25 }
 0x133   :  { %v4279_v30 = vpop.eup %4278  ;;  %4288 = vrcp.f32 %v578_v27  ;;  %v580_v31 = vadd.f32 1.0, %v4277_v28  ;;  %v3515_v27 = vcombine.low %v3504_v25, %v3504_v25  ;;  %v4157_v28 = vld [vmem:[%s5829_s5 + $0x4] ss:$8 sps:$4 sm:$0xff]  }
 0x134   :  { %4290 = vrcp.f32 %v579_v29  ;;  %v581_v32 = vadd.f32 1.0, %v4279_v30 }
 0x135   :  { %4292 = vrcp.f32 %v580_v31  ;;  %v4771_v29 = vsel %vm892_vm8, %v3515_v27, 0 }
 0x136   :  { %4294 = vrcp.f32 %v581_v32 }
 0x138   :  { %v4281_v33 = vpop.eup %4280 }
 0x139   :  { %v4283_v34 = vpop.eup %4282  ;;  %v582_v35 = vadd.f32 1.0, %v4281_v33 }
 0x13a   :  { %v4285_v36 = vpop.eup %4284  ;;  %v583_v37 = vadd.f32 1.0, %v4283_v34 }
 0x13b   :  { %v4287_v38 = vpop.eup %4286  ;;  %4296 = vrcp.f32 %v582_v35  ;;  %v584_v39 = vadd.f32 1.0, %v4285_v36 }
 0x13c   :  { %4298 = vrcp.f32 %v583_v37  ;;  %v585_v40 = vadd.f32 1.0, %v4287_v38 }
 0x13d   :  { %v4289_v41 = vpop.eup %4288  ;;  %4300 = vrcp.f32 %v584_v39 }
 0x13e   :  { %v4291_v42 = vpop.eup %4290  ;;  %4302 = vrcp.f32 %v585_v40  ;;  %v4155_v40 = vld [vmem:[%s5829_s5] ss:$8 sps:$4 sm:$0xff]  }
 0x13f   :  { %v4293_v43 = vpop.eup %4292 }
 0x140   :  { %v4295_v44 = vpop.eup %4294  ;;  %v604_v45 = vpack.c.bf16 %v4293_v43, %v4289_v41 }
 0x141   :  { %v605_v46 = vpack.c.bf16 %v4295_v44, %v4291_v42  ;;  %v4160_v42 = vld [vmem:[%s5829_s5 + $0x14] ss:$8 sps:$4 sm:$0xff]   ;;  %v4158_v44 = vld [vmem:[%s5829_s5 + $0x10] ss:$8 sps:$4 sm:$0xff]  }
 0x143   :  { %624 = vmatprep.subr.bf16.mxu1 %v605_v46  ;;  %v4161_v46 = vld [vmem:[%s5829_s5 + $0x20] ss:$8 sps:$4 sm:$0xff]  }
 0x144   :  { %625 = vmatpush1.bf16.msra.mxu1 %v604_v45  ;;  %v4163_v45 = vld [vmem:[%s5829_s5 + $0x24] ss:$8 sps:$4 sm:$0xff]  }
 0x145   :  { %v4297_v47 = vpop.eup %4296 }
 0x146   :  { %v4299_v48 = vpop.eup %4298 }
 0x147   :  { %v4301_v49 = vpop.eup %4300 }
 0x148   :  { %v4303_v52 = vpop.eup %4302  ;;  %v606_v56 = vpack.c.bf16 %v4301_v49, %v4297_v47  ;;  %v4166_v47 = vld [vmem:[%s5829_s5 + $0x34] ss:$8 sps:$4 sm:$0xff]   ;;  %v4169_v49 = vld [vmem:[%s5829_s5 + $0x44] ss:$8 sps:$4 sm:$0xff]  }
 0x149   :  { %v607_v57 = vpack.c.bf16 %v4303_v52, %v4299_v48  ;;  %v4164_v48 = vld [vmem:[%s5829_s5 + $0x30] ss:$8 sps:$4 sm:$0xff]  }
 0x14a   :  { %v619_v58 = vsel %vm443_vm2, %v606_v56, 0  ;;  %v813_v52 = vld [vmem:[%s5829_s5 + $0x50] sm:$0x33]  ;;  %v4167_v56 = vld [vmem:[%s5829_s5 + $0x40] ss:$8 sps:$4 sm:$0xff]  }
 0x14b   :  { %3480 = vmatprep.subr.msk.bf16.mxu1 %vm443_vm2, %v607_v57  ;;  %v4816_v57 = vcombine.high %v813_v52, %v813_v52 }
 0x14c   :  { %627 = vmatpush1.bf16.msra.mxu1 %v619_v58  ;;  %v3529_v58 = vcombine.low %v813_v52, %v813_v52 }
 0x14d   :  { %761 = vmatprep.subr.bf16.mxu1 %v5840_v2 }
 0x14f   :  { %3481 = vmatmul.mubr.msk.bf16.vlgmr.msra.gmra.mrb[0].mxu1 %vm613_vm5, %v4126_v59  ;;  %v4821_v59 = vsel %vm892_vm8, %v3529_v58, 0 }
 0x150   :  { %762 = vmatpush1.bf16.msra.mxu1 %v4127_v60  ;;  %v4174_v60 = vld [vmem:[%s5829_s5 + $0xb4] ss:$8 sps:$4 sm:$0xff]  }
 0x151   :  { %763 = vmatprep.subr.bf16.mxu1 %v5840_v2 }
 0x154   :  { %764 = vmatpush1.bf16.msra.mxu1 %v4128_v61  ;;  %v4172_v61 = vld [vmem:[%s5829_s5 + $0xb0] ss:$8 sps:$4 sm:$0xff]  }
 0x155   :  { %765 = vmatprep.subr.bf16.mxu1 %v5840_v2 }
 0x158   :  { %766 = vmatpush1.bf16.msra.mxu1 %v4129_v62  ;;  %v4177_v62 = vld [vmem:[%s5829_s5 + $0xc4] ss:$8 sps:$4 sm:$0xff]  }
 0x159   :  { %767 = vmatprep.subr.bf16.mxu1 %v5840_v2 }
 0x15c   :  { %768 = vmatpush1.bf16.msra.mxu1 %v4130_v63  ;;  %v4175_v63 = vld [vmem:[%s5829_s5 + $0xc0] ss:$8 sps:$4 sm:$0xff]  }
 0x15d   :  { %769 = vmatprep.subr.bf16.mxu1 %v5840_v2 }
 0x160   :  { %770 = vmatpush1.bf16.msra.mxu1 %v4131_v0  ;;  %v4180_v0 = vld [vmem:[%s5829_s5 + $0xd4] ss:$8 sps:$4 sm:$0xff]  }
 0x161   :  { %771 = vmatprep.subr.bf16.mxu1 %v5840_v2 }
 0x164   :  { %772 = vmatpush1.bf16.msra.mxu1 %v4132_v1  ;;  %v4845_v1 = vld [vmem:[%s5829_s5 + $0xd0] ss:$8 sps:$4 sm:$0xff]  }
 0x165   :  { %773 = vmatprep.subr.bf16.mxu1 %v5840_v2 }
 0x168   :  { %774 = vmatpush1.bf16.msra.mxu1 %v4133_v3  ;;  %v4850_v3 = vld [vmem:[%s5829_s5 + $0xe4] ss:$8 sps:$4 sm:$0xff]  }
 0x169   :  { %775 = vmatprep.subr.bf16.mxu1 %v5840_v2 }
 0x16c   :  { %776 = vmatpush1.bf16.msra.mxu1 %v4134_v4  ;;  %v4856_v4 = vld [vmem:[%s5829_s5 + $0xe0] ss:$8 sps:$4 sm:$0xff]  }
 0x16d   :  { %777 = vmatprep.subr.bf16.mxu1 %v5840_v2 }
 0x170   :  { %778 = vmatpush1.bf16.msra.mxu1 %v4135_v5  ;;  %v4862_v5 = vld [vmem:[%s5829_s5 + $0xf4] ss:$8 sps:$4 sm:$0xff]  }
 0x171   :  { %779 = vmatprep.subr.bf16.mxu1 %v5840_v2 }
 0x174   :  { %780 = vmatpush1.bf16.msra.mxu1 %v4136_v6  ;;  %v3543_v6 = vld [vmem:[%s5829_s5 + $0x100] sm:$0x33] }
 0x175   :  { %781 = vmatprep.subr.bf16.mxu1 %v5840_v2 }
 0x178   :  { %782 = vmatpush1.bf16.msra.mxu1 %v4725_v8 }
 0x179   :  { %899 = vmatprep.subr.bf16.mxu1 %v4140_v9  ;;  %v4874_v9 = vcombine.high %v3543_v6, %v3543_v6 }
 0x222   :  { %v658_v10 = vpop.f32.mrb[0].mxu1 }
 0x223   :  { %v660_v11 = vpop.f32.mrb[1].mxu1 }
 0x224   :  { %v662_v12 = vpop.f32.mrb[2].mxu1 }
 0x225   :  { %v667_v13 = vpack.c.bf16 %v662_v12, %v658_v10  ;;  %v664_v14 = vpop.f32.mrb[3].mxu1  ;;  %v3554_v10 = vcombine.low %v3543_v6, %v3543_v6  ;;  %v4885_v12 = vld [vmem:[%s5829_s5 + $0x10c] ss:$8 sps:$4 sm:$0xff]  }
 0x226   :  { %v668_v15 = vpack.c.bf16 %v664_v14, %v660_v11 }
 0x227   :  { %v4880_v11 = vsel %vm892_vm8, %v3554_v10, 0 }
 0x228   :  { %3493 = vmatprep.mubr.msk.bf16.mxu1 %vm753_vm7, %v668_v15  ;;  %v4898_v15 = vld [vmem:[%s5829_s5 + $0x11c] ss:$8 sps:$4 sm:$0xff]  }
 0x229   :  { %794 = vmatmul.mubr.bf16.vlgmr.msra.gmra.mrb[4].mxu1 %v667_v13  ;;  %v4891_v13 = vld [vmem:[%s5829_s5 + $0x108] ss:$8 sps:$4 sm:$0xff]  }
 0x22a   :  { %900 = vmatpush1.bf16.msra.mxu1 %v4138_v16  ;;  %931 = vmatprep.mubr.bf16.mxu1 %v5840_v2  ;;  %v4905_v16 = vld [vmem:[%s5829_s5 + $0x118] ss:$8 sps:$4 sm:$0xff]  }
 0x22b   :  { %901 = vmatprep.subr.bf16.mxu1 %v4143_v17  ;;  %v4912_v17 = vld [vmem:[%s5829_s5 + $0x12c] ss:$8 sps:$4 sm:$0xff]  }
 0x22e   :  { %902 = vmatpush1.bf16.msra.mxu1 %v4141_v18  ;;  %v4918_v18 = vld [vmem:[%s5829_s5 + $0x128] ss:$8 sps:$4 sm:$0xff]  }
 0x22f   :  { %903 = vmatprep.subr.bf16.mxu1 %v4146_v19  ;;  %v4924_v19 = vld [vmem:[%s5829_s5 + $0x13c] ss:$8 sps:$4 sm:$0xff]  }
 0x232   :  { %904 = vmatpush1.bf16.msra.mxu1 %v4144_v20  ;;  %v4930_v20 = vld [vmem:[%s5829_s5 + $0x138] ss:$8 sps:$4 sm:$0xff]  }
 0x233   :  { %905 = vmatprep.subr.bf16.mxu1 %v4149_v21  ;;  %v4936_v21 = vld [vmem:[%s5829_s5 + $0x14c] ss:$8 sps:$4 sm:$0xff]  }
 0x236   :  { %906 = vmatpush1.bf16.msra.mxu1 %v4147_v22  ;;  %v3568_v22 = vld [vmem:[%s5829_s5 + $0x158] sm:$0x33] }
 0x237   :  { %907 = vmatprep.subr.bf16.mxu1 %v4152_v23  ;;  %v4945_v23 = vld [vmem:[%s5829_s5 + $0x148] ss:$8 sps:$4 sm:$0xff]   ;;  %v3579_v25 = vcombine.low %v3568_v22, %v3568_v22 }
 0x239   :  { %v4954_v27 = vsel %vm892_vm8, %v3579_v25, 0 }
 0x23a   :  { %908 = vmatpush1.bf16.msra.mxu1 %v4150_v24  ;;  %v4948_v24 = vcombine.high %v3568_v22, %v3568_v22 }
 0x23b   :  { %3517 = vmatprep.subr.msk.bf16.mxu1 %vm892_vm8, %v4763_v26 }
 0x23e   :  { %910 = vmatpush1.bf16.msra.mxu1 %v4771_v29 }
 0x23f   :  { %1005 = vmatprep.subr.bf16.mxu1 %v4157_v28  ;;  %v4959_v28 = vld [vmem:[%s5829_s5 + $0x164] ss:$8 sps:$4 sm:$0xff]  }
 0x2fc   :  { %v795_v30 = vpop.f32.mrb[4].mxu1 }
 0x2fd   :  { %v797_v31 = vpop.f32.mrb[5].mxu1 }
 0x2fe   :  { %v798_v32 = vpop.f32.mrb[6].mxu1  ;;  %v4971_v31 = vld [vmem:[%s5829_s5 + $0x174] ss:$8 sps:$4 sm:$0xff]  }
 0x2ff   :  { %v4774_v33 = vpack.c.bf16 %v798_v32, %v795_v30  ;;  %v800_v34 = vpop.f32.mrb[7].mxu1  ;;  %v4965_v30 = vld [vmem:[%s5829_s5 + $0x160] ss:$8 sps:$4 sm:$0xff]   ;;  %v4981_v32 = vld [vmem:[%s5829_s5 + $0x170] ss:$8 sps:$4 sm:$0xff]  }
 0x300   :  { %v4988_v34 = vld [vmem:[%s5829_s5 + $0x184] ss:$8 sps:$4 sm:$0xff]  }
 0x301   :  { %v827_v35 = vshrl.u32 %v4774_v33, 16  ;;  %v829_v36 = vshll.u32 %v4774_v33, 16  ;;  %v1061_v14 = vrot.slane %v4774_v33, 1 }
 0x303   :  { %v831_v37 = vrot.slane %v829_v36, 1  ;;  %v4778_v38 = vrot.slane %v827_v35, 1  ;;  %v4780_v39 = vrot.slane %v829_v36, 2  ;;  %v5000_v36 = vld [vmem:[%s5829_s5 + $0x194] ss:$8 sps:$4 sm:$0xff]  }
 0x305   :  { %v832_v41 = vor.u32 %v831_v37, %v827_v35  ;;  %v1187_v43 = vor.u32 %v4780_v39, %v4778_v38  ;;  %v4994_v35 = vld [vmem:[%s5829_s5 + $0x180] ss:$8 sps:$4 sm:$0xff]   ;;  %v5006_v37 = vld [vmem:[%s5829_s5 + $0x190] ss:$8 sps:$4 sm:$0xff]   ;;  %v5012_v38 = vld [vmem:[%s5829_s5 + $0x1a4] ss:$8 sps:$4 sm:$0xff]  }
 0x306   :  { %v3593_v39 = vld [vmem:[%s5829_s5 + $0x1b0] sm:$0x33] }
 0x307   :  { %3518 = vmatmul.mubr.msk.bf16.vlgmr.msra.gmra.mrb[8].mxu1 %vm888_vm9, %v832_v41  ;;  %v5024_v41 = vcombine.high %v3593_v39, %v3593_v39 }
 0x308   :  { %1006 = vmatpush1.bf16.msra.mxu1 %v4155_v40  ;;  %1037 = vmatprep.mubr.bf16.mxu1 %v5840_v2  ;;  %v5021_v40 = vld [vmem:[%s5829_s5 + $0x1a0] ss:$8 sps:$4 sm:$0xff]  }
 0x309   :  { %1007 = vmatprep.subr.bf16.mxu1 %v4160_v42  ;;  %v3604_v42 = vcombine.low %v3593_v39, %v3593_v39 }
 0x30c   :  { %1008 = vmatpush1.bf16.msra.mxu1 %v4158_v44  ;;  %v1311_v44 = vrot.slane %v4774_v33, 2 }
 0x30d   :  { %1009 = vmatprep.subr.bf16.mxu1 %v4163_v45  ;;  %v1423_v45 = vld [vmem:[%s5830_s6] sm:$0x3] }
 0x310   :  { %1010 = vmatpush1.bf16.msra.mxu1 %v4161_v46  ;;  %v5040_v46 = vrot.slane %v1423_v45, %v538_v51 }
 0x311   :  { %1011 = vmatprep.subr.bf16.mxu1 %v4166_v47  ;;  %v5044_v47 = vrot.slane %v1423_v45, %v542_v53 }
 0x312   :  { %5885 = vst [vmem:[#allocation5_spill] sm:$0xff] %v5040_v46 }
 0x313   :  { %5886 = vst [vmem:[#allocation6_spill] sm:$0xff] %v5044_v47 }
 0x314   :  { %1012 = vmatpush1.bf16.msra.mxu1 %v4164_v48 }
 0x315   :  { %1013 = vmatprep.subr.bf16.mxu1 %v4169_v49 }
 0x318   :  { %1014 = vmatpush1.bf16.msra.mxu1 %v4167_v56 }
 0x319   :  { %3531 = vmatprep.subr.msk.bf16.mxu1 %vm892_vm8, %v4816_v57 }
 0x31c   :  { %1016 = vmatpush1.bf16.msra.mxu1 %v4821_v59 }
 0x31d   :  { %1126 = vmatprep.subr.bf16.mxu1 %v4174_v60 }
 0x31f   :  { %3532 = vmatmul.mubr.msk.bf16.vlgmr.msra.gmra.mrb[8].mxu1 %vm888_vm9, %v4774_v33 }
 0x320   :  { %1127 = vmatpush1.bf16.msra.mxu1 %v4172_v61  ;;  %1158 = vmatprep.mubr.bf16.mxu1 %v5840_v2 }
 0x321   :  { %1128 = vmatprep.subr.bf16.mxu1 %v4177_v62 }
 0x324   :  { %1129 = vmatpush1.bf16.msra.mxu1 %v4175_v63 }
 0x325   :  { %1130 = vmatprep.subr.bf16.mxu1 %v4180_v0 }
 0x328   :  { %1131 = vmatpush1.bf16.msra.mxu1 %v4845_v1 }
 0x329   :  { %1132 = vmatprep.subr.bf16.mxu1 %v4850_v3 }
 0x32c   :  { %1133 = vmatpush1.bf16.msra.mxu1 %v4856_v4 }
 0x32d   :  { %1134 = vmatprep.subr.bf16.mxu1 %v4862_v5 }
 0x330   :  { %1135 = vmatpush1.bf16.msra.mxu1 %v4871_v7 }
 0x331   :  { %3556 = vmatprep.subr.msk.bf16.mxu1 %vm892_vm8, %v4874_v9 }
 0x334   :  { %1137 = vmatpush1.bf16.msra.mxu1 %v4880_v11 }
 0x335   :  { %1252 = vmatprep.subr.bf16.mxu1 %v4885_v12 }
 0x337   :  { %3557 = vmatmul.mubr.msk.bf16.vlgmr.msra.gmra.mrb[8].mxu1 %vm888_vm9, %v1061_v14 }
 0x338   :  { %1253 = vmatpush1.bf16.msra.mxu1 %v4891_v13  ;;  %1284 = vmatprep.mubr.bf16.mxu1 %v5840_v2 }
 0x339   :  { %1254 = vmatprep.subr.bf16.mxu1 %v4898_v15 }
 0x33c   :  { %1255 = vmatpush1.bf16.msra.mxu1 %v4905_v16 }
 0x33d   :  { %1256 = vmatprep.subr.bf16.mxu1 %v4912_v17 }
 0x340   :  { %1257 = vmatpush1.bf16.msra.mxu1 %v4918_v18 }
 0x341   :  { %1258 = vmatprep.subr.bf16.mxu1 %v4924_v19 }
 0x344   :  { %1259 = vmatpush1.bf16.msra.mxu1 %v4930_v20 }
 0x345   :  { %1260 = vmatprep.subr.bf16.mxu1 %v4936_v21 }
 0x348   :  { %1261 = vmatpush1.bf16.msra.mxu1 %v4945_v23 }
 0x349   :  { %3581 = vmatprep.subr.msk.bf16.mxu1 %vm892_vm8, %v4948_v24 }
 0x34c   :  { %1263 = vmatpush1.bf16.msra.mxu1 %v4954_v27 }
 0x34d   :  { %1376 = vmatprep.subr.bf16.mxu1 %v4959_v28 }
 0x34f   :  { %3582 = vmatmul.mubr.msk.bf16.vlgmr.msra.gmra.mrb[8].mxu1 %vm888_vm9, %v1187_v43  ;;  %v5030_v43 = vsel %vm892_vm8, %v3604_v42, 0 }
 0x350   :  { %1377 = vmatpush1.bf16.msra.mxu1 %v4965_v30  ;;  %1408 = vmatprep.mubr.bf16.mxu1 %v5840_v2 }
 0x351   :  { %1378 = vmatprep.subr.bf16.mxu1 %v4971_v31 }
 0x354   :  { %1379 = vmatpush1.bf16.msra.mxu1 %v4981_v32 }
 0x355   :  { %1380 = vmatprep.subr.bf16.mxu1 %v4988_v34 }
 0x358   :  { %1381 = vmatpush1.bf16.msra.mxu1 %v4994_v35 }
 0x359   :  { %1382 = vmatprep.subr.bf16.mxu1 %v5000_v36 }
 0x35c   :  { %1383 = vmatpush1.bf16.msra.mxu1 %v5006_v37 }
 0x35d   :  { %1384 = vmatprep.subr.bf16.mxu1 %v5012_v38 }
 0x360   :  { %1385 = vmatpush1.bf16.msra.mxu1 %v5021_v40 }
 0x361   :  { %3606 = vmatprep.subr.msk.bf16.mxu1 %vm892_vm8, %v5024_v41 }
 0x364   :  { %1387 = vmatpush1.bf16.msra.mxu1 %v5030_v43 }
 0x367   :  { %3607 = vmatmul.mubr.msk.bf16.vlgmr.msra.gmra.mrb[8].mxu1 %vm888_vm9, %v1311_v44 }
 0x43a   :  { %v1410_v48 = vpop.f32.mrb[8].mxu1 }
 0x43b   :  { %v1435_v49 = vadd.f32 %v5040_v46, %v1410_v48  ;;  %v1412_v52 = vpop.f32.mrb[9].mxu1 }
 0x43c   :  { %v1436_v33 = vadd.f32 %v5044_v47, %v1412_v52  ;;  %v1414_v56 = vpop.f32.mrb[10].mxu1 }
 0x43d   :  { %v1439_v58 = vsub.f32 0.0, %v1435_v49  ;;  %v1437_v60 = vadd.f32 %v5040_v46, %v1414_v56  ;;  %v1416_v61 = vpop.f32.mrb[11].mxu1 }
 0x43e   :  { %v1440_v62 = vsub.f32 0.0, %v1436_v33  ;;  %v1438_v63 = vadd.f32 %v5044_v47, %v1416_v61 }
 0x43f   :  { %v1443_v51 = vmul.f32 1.442695, %v1439_v58  ;;  %v1441_v0 = vsub.f32 0.0, %v1437_v60 }
 0x440   :  { %v1445_v6 = vmul.f32 1.442695, %v1440_v62  ;;  %v1442_v50 = vsub.f32 0.0, %v1438_v63  ;;  %v5055_v62 = vld [vmem:[%s5831_s7] sm:$0x7] }
 0x441   :  { %4304 = vpow2.f32 %v1443_v51  ;;  %v1447_v53 = vmul.f32 1.442695, %v1441_v0  ;;  %5887 = vst [vmem:[#allocation7_spill] sm:$0xff] %v5055_v62  ;;  %v5060_v63 = vld [vmem:[%s5832_s8] sm:$0xff]   ;;  %v5069_v51 = vld [vmem:[%s5832_s8 + $0x8] sm:$0xff]   ;;  %v5076_v0 = vld [vmem:[%s5832_s8 + $0x10] sm:$0xff]  }
 0x442   :  { %4306 = vpow2.f32 %v1445_v6  ;;  %v1449_v10 = vmul.f32 1.442695, %v1442_v50  ;;  %5888 = vst [vmem:[#allocation8_spill] sm:$0xff] %v5060_v63  ;;  %5889 = vst [vmem:[#allocation9_spill] sm:$0xff] %v5069_v51  ;;  %v5083_v6 = vld [vmem:[%s5832_s8 + $0x18] sm:$0xff]   ;;  %v5090_v50 = vld [vmem:[%s5832_s8 + $0x20] sm:$0xff]  }
 0x443   :  { %4308 = vpow2.f32 %v1447_v53  ;;  %5890 = vst [vmem:[#allocation10_spill] sm:$0xff] %v5076_v0  ;;  %5891 = vst [vmem:[#allocation11_spill] sm:$0xff] %v5083_v6  ;;  %v5097_v53 = vld [vmem:[%s5832_s8 + $0x28] sm:$0xff]  }
 0x444   :  { %4310 = vpow2.f32 %v1449_v10  ;;  %5892 = vst [vmem:[#allocation12_spill] sm:$0xff] %v5090_v50  ;;  %5893 = vst [vmem:[#allocation13_spill] sm:$0xff] %v5097_v53  ;;  %v5104_v10 = vld [vmem:[%s5832_s8 + $0x30] sm:$0xff]  }
 0x445   :  { %5894 = vst [vmem:[#allocation14_spill] sm:$0xff] %v5104_v10 }
 0x44b   :  { %v4305_v14 = vpop.eup %4304 }
 0x44c   :  { %v4307_v22 = vpop.eup %4306  ;;  %v1451_v25 = vadd.f32 1.0, %v4305_v14  ;;  %v5111_v14 = vld [vmem:[%s5832_s8 + $0x38] sm:$0xff]  }
 0x44d   :  { %v4309_v39 = vpop.eup %4308  ;;  %v1452_v42 = vadd.f32 1.0, %v4307_v22  ;;  %5895 = vst [vmem:[#allocation15_spill] sm:$0xff] %v5111_v14  ;;  %v5118_v22 = vld [vmem:[%s5832_s8 + $0x40] sm:$0xff]  }
 0x44e   :  { %v4311_v44 = vpop.eup %4310  ;;  %4312 = vrcp.f32 %v1451_v25  ;;  %v1453_v45 = vadd.f32 1.0, %v4309_v39  ;;  %5896 = vst [vmem:[#allocation16_spill] sm:$0xff] %v5118_v22  ;;  %v5126_v25 = vld [vmem:[%s5832_s8 + $0x48] sm:$0xff]   ;;  %v5845_v39 = vmov 0.0  }
 0x44f   :  { %4314 = vrcp.f32 %v1452_v42  ;;  %v1454_v48 = vadd.f32 1.0, %v4311_v44  ;;  %5897 = vst [vmem:[#allocation17_spill] sm:$0xff] %v5126_v25  ;;  %3862 = vmatprep.subr.bf16.mxu1 %v5845_v39  ;;  %v5134_v42 = vld [vmem:[%s5833_s9 + $0x78] sm:$0xff]   ;;  %v5141_v44 = vld [vmem:[%s5833_s9 + $0x80] sm:$0xff]   ;;  %3872 = vmatprep.mubr.msk.bf16.mxu1 %vm4460_vm12, %v5845_v39 }
 0x450   :  { %4316 = vrcp.f32 %v1453_v45  ;;  %3863 = vmatpush3.bf16.msra.mxu1 %v5134_v42  ;;  %v5148_v45 = vld [vmem:[%s5833_s9 + $0x88] sm:$0xff]  }
 0x451   :  { %4318 = vrcp.f32 %v1454_v48  ;;  %3864 = vmatprep.subr.bf16.mxu1 %v5845_v39 }
 0x454   :  { %3865 = vmatpush3.bf16.msra.mxu1 %v5141_v44 }
 0x455   :  { %3866 = vmatprep.subr.bf16.mxu1 %v5845_v39 }
 0x458   :  { %v4313_v49 = vpop.eup %4312  ;;  %3867 = vmatpush3.bf16.msra.mxu1 %v5148_v45 }
 0x459   :  { %v4315_v52 = vpop.eup %4314  ;;  %3868 = vmatprep.subr.bf16.mxu1 %v5845_v39 }
 0x45a   :  { %v4317_v33 = vpop.eup %4316 }
 0x45b   :  { %v4319_v56 = vpop.eup %4318  ;;  %v1464_v58 = vpack.c.bf16 %v4317_v33, %v4313_v49 }
 0x45c   :  { %v1465_v60 = vpack.c.bf16 %v4319_v56, %v4315_v52  ;;  %v5155_v56 = vld [vmem:[%s5833_s9 + $0x28] sm:$0xff]  }
 0x45d   :  { %v1472_v61 = vsel %vm1470_vm10, %v1464_v58, 0  ;;  %5898 = vst [vmem:[#allocation18_spill] sm:$0xff] %v5155_v56 }
 0x45e   :  { %3608 = vmatprep.subr.msk.bf16.mxu0 %vm1470_vm10, %v1465_v60 }
 0x45f   :  { %1478 = vmatpush1.bf16.msra.mxu0 %v1472_v61  ;;  %v5162_v61 = vld [vmem:[%s5833_s9 + $0x30] sm:$0xff]  }
 0x460   :  { %1603 = vmatprep.subr.bf16.mxu0 %v5840_v2  ;;  %5899 = vst [vmem:[#allocation19_spill] sm:$0xff] %v5162_v61 }
 0x462   :  { %3609 = vmatmul.mubr.msk.bf16.vlgmr.msra.gmra.mrb[8].mxu0 %vm1466_vm11, %v5055_v62 }
 0x463   :  { %1604 = vmatpush1.bf16.msra.mxu0 %v5060_v63 }
 0x464   :  { %1605 = vmatprep.subr.bf16.mxu0 %v5840_v2 }
 0x467   :  { %1606 = vmatpush1.bf16.msra.mxu0 %v5069_v51  ;;  %v4394_v51 = vld [vmem:[%s5825_s1 + $0x84] ss:$8 sps:$4 sm:$0xff]  }
 0x468   :  { %1607 = vmatprep.subr.bf16.mxu0 %v5840_v2 }
 0x46b   :  { %1608 = vmatpush1.bf16.msra.mxu0 %v5076_v0 }
 0x46c   :  { %1609 = vmatprep.subr.bf16.mxu0 %v5840_v2 }
 0x46f   :  { %1610 = vmatpush1.bf16.msra.mxu0 %v5083_v6 }
 0x470   :  { %1611 = vmatprep.subr.bf16.mxu0 %v5840_v2 }
 0x473   :  { %1612 = vmatpush1.bf16.msra.mxu0 %v5090_v50  ;;  %v4380_v50 = vld [vmem:[%s5825_s1 + $0x34] ss:$8 sps:$4 sm:$0xff]  }
 0x474   :  { %1613 = vmatprep.subr.bf16.mxu0 %v5840_v2 }
 0x477   :  { %1614 = vmatpush1.bf16.msra.mxu0 %v5097_v53 }
 0x478   :  { %1615 = vmatprep.subr.bf16.mxu0 %v5840_v2 }
 0x47b   :  { %1616 = vmatpush1.bf16.msra.mxu0 %v5104_v10 }
 0x47c   :  { %1617 = vmatprep.subr.bf16.mxu0 %v5840_v2 }
 0x47f   :  { %1618 = vmatpush1.bf16.msra.mxu0 %v5111_v14 }
 0x480   :  { %1619 = vmatprep.subr.bf16.mxu0 %v5840_v2 }
 0x483   :  { %1620 = vmatpush1.bf16.msra.mxu0 %v5118_v22 }
 0x484   :  { %1621 = vmatprep.subr.bf16.mxu0 %v5840_v2  ;;  %v3691_v2 = vld [vmem:[%s5824_s0 + $0x20] sm:$0xff] }
 0x487   :  { %1622 = vmatpush1.bf16.msra.mxu0 %v5126_v25 }
 0x488   :  { %3820 = vmatprep.subr.bf16.mxu0 %v5845_v39 }
 0x535   :  { %v1511_v48 = vpop.f32.mrb[8].mxu0 }
 0x536   :  { %v1513_v49 = vpop.f32.mrb[9].mxu0  ;;  %v1518_v58 = vpack.c.bf16 %v1511_v48, %v1511_v48  ;;  %v5176_v48 = vld [vmem:[%s5833_s9 + $0x40] sm:$0xff]  }
 0x537   :  { %v1519_v52 = vpack.c.bf16 %v1513_v49, %v1513_v49  ;;  %v1515_v33 = vpop.f32.mrb[10].mxu0  ;;  %v5169_v49 = vld [vmem:[%s5833_s9 + $0x38] sm:$0xff]   ;;  %5901 = vst [vmem:[#allocation21_spill] sm:$0xff] %v5176_v48 }
 0x538   :  { %v1516_v60 = vpop.f32.mrb[11].mxu0  ;;  %5900 = vst [vmem:[#allocation20_spill] sm:$0xff] %v5169_v49  ;;  %v5189_v33 = vld [vmem:[%s5833_s9 + $0x48] sm:$0xff]  }
 0x539   :  { %3620 = vmatprep.mubr.msk.bf16.mxu0 %vm103_vm1, %v1519_v52  ;;  %v5184_v52 = vld [vmem:[%s5833_s9 + $0x90] sm:$0xff]   ;;  %5903 = vst [vmem:[#allocation23_spill] sm:$0xff] %v5189_v33  ;;  %v4378_v60 = vld [vmem:[%s5825_s1 + $0x24] ss:$8 sps:$4 sm:$0xff]  }
 0x53a   :  { %1636 = vmatmul.mubr.bf16.vlgmr.msra.gmra.mrb[12].mxu0 %v1518_v58  ;;  %5902 = vst [vmem:[#allocation22_spill] sm:$0xff] %v5184_v52  ;;  %3869 = vmatpush3.bf16.msra.mxu1 %v5184_v52  ;;  %v5198_v58 = vld [vmem:[%s5833_s9 + $0x98] sm:$0xff]  }
 0x53b   :  { %3821 = vmatpush3.bf16.msra.mxu0 %v5155_v56  ;;  %3870 = vmatprep.subr.bf16.mxu1 %v5845_v39  ;;  %5904 = vst [vmem:[#allocation24_spill] sm:$0xff] %v5198_v58 }
 0x53c   :  { %3822 = vmatprep.subr.bf16.mxu0 %v5845_v39  ;;  %3830 = vmatprep.mubr.msk.bf16.mxu0 %vm4460_vm12, %v5845_v39 }
 0x53e   :  { %3871 = vmatpush3.bf16.msra.mxu1 %v5198_v58 }
 0x53f   :  { %3823 = vmatpush3.bf16.msra.mxu0 %v5162_v61  ;;  %2109 = vmatprep.subr.bf16.mxu1 %v4378_v60 }
 0x540   :  { %3824 = vmatprep.subr.bf16.mxu0 %v5845_v39 }
 0x543   :  { %3825 = vmatpush3.bf16.msra.mxu0 %v5169_v49  ;;  %v3693_v49 = vld [vmem:[%s5824_s0 + $0x30] sm:$0xff] }
 0x544   :  { %3826 = vmatprep.subr.bf16.mxu0 %v5845_v39 }
 0x547   :  { %3827 = vmatpush3.bf16.msra.mxu0 %v5176_v48 }
 0x548   :  { %3828 = vmatprep.subr.bf16.mxu0 %v5845_v39 }
 0x54b   :  { %3829 = vmatpush3.bf16.msra.mxu0 %v5189_v33  ;;  %v3692_v33 = vld [vmem:[%s5824_s0 + $0x28] sm:$0xff] }
 0x54c   :  { %3834 = vmatprep.subr.bf16.mxu0 %v5845_v39  ;;  %v5214_v48 = vpack.c.bf16 %v3692_v33, %v3691_v2  ;;  %v3694_v39 = vld [vmem:[%s5824_s0 + $0x38] sm:$0xff]  ;;  %v5230_v2 = vld [vmem:[%s5833_s9] sm:$0xff]  }
 0x54d   :  { %v5222_v60 = vpack.c.bf16 %v3694_v39, %v3693_v49  ;;  %5905 = vst [vmem:[#allocation25_spill] sm:$0xff] %v5230_v2 }
 0x54e   :  { %v5854_v56 = vshll.u32 %v5214_v48, 16  ;;  %v5858_v53 = vshrl.u32 %v5214_v48, 16 }
 0x54f   :  { %v5857_v49 = vshll.u32 %v5222_v60, 16 }
 0x550   :  { %v2093_v39 = vrot.slane %v5854_v56, 1 }
 0x552   :  { %v2094_v56 = vor.u32 %v2093_v39, %v5858_v53  ;;  %v4381_v39 = vld [vmem:[%s5825_s1 + $0x30] ss:$8 sps:$4 sm:$0xff]  }
 0x60d   :  { %v1637_v61 = vpop.f32.mrb[12].mxu0 }
 0x60e   :  { %v5225_v25 = vpack.c.bf16 %v1637_v61, %v1637_v61  ;;  %v1639_v22 = vpop.f32.mrb[13].mxu0 }
 0x60f   :  { %v1640_v14 = vpop.f32.mrb[14].mxu0  ;;  %v5907_v22 = vmov 0.0  }
 0x610   :  { %v1666_v33 = vshrl.u32 %v5225_v25, 16  ;;  %v1641_v10 = vpop.f32.mrb[15].mxu0  ;;  %v5242_v14 = vld [vmem:[%s5833_s9 + $0x8] sm:$0xff]  }
 0x611   :  { %5906 = vst [vmem:[#allocation26_spill] sm:$0xff] %v5242_v14  ;;  %v4379_v10 = vld [vmem:[%s5825_s1 + $0x20] ss:$8 sps:$4 sm:$0xff]  }
 0x612   :  { %v1912_v61 = vrot.slane %v1666_v33, 1  ;;  %3831 = vmatmul.mubr.msk.bf16.vlgmr.msra.gmra.mrb[16].mxu0 %vm1698_vm13, %v1666_v33  ;;  %v5908_v33 = vmov 0  }
 0x613   :  { %3835 = vmatpush3.bf16.msra.mxu0 %v5230_v2  ;;  %3844 = vmatprep.mubr.msk.bf16.mxu0 %vm4460_vm12, %v5907_v22  ;;  %v2098_v2 = vrot.slane %v5857_v49, 1  ;;  %v5277_v49 = vld [vmem:[%s5833_s9 + $0x18] sm:$0xff]  }
 0x614   :  { %3873 = vmatmul.mubr.msk.bf16.vlgmr.msra.gmra.mrb[12].mxu1 %vm1698_vm13, %v1912_v61  ;;  %3836 = vmatprep.subr.bf16.mxu0 %v5907_v22  ;;  %v5263_v61 = vld [vmem:[%s5833_s9 + $0x10] sm:$0xff]   ;;  %5910 = vst [vmem:[#allocation28_spill] sm:$0xff] %v5277_v49 }
 0x615   :  { %2110 = vmatpush1.bf16.msra.mxu1 %v4379_v10  ;;  %2141 = vmatprep.mubr.bf16.mxu1 %v5908_v33  ;;  %5909 = vst [vmem:[#allocation27_spill] sm:$0xff] %v5263_v61  ;;  %v2099_v10 = vsel %vm67_vm0, %v2094_v56, %v2098_v2  ;;  %v4383_v56 = vld [vmem:[%s5825_s1] ss:$8 sps:$4 sm:$0xff]  }
 0x616   :  { %2111 = vmatprep.subr.bf16.mxu1 %v4380_v50  ;;  %v4382_v50 = vld [vmem:[%s5825_s1 + $0x4] ss:$8 sps:$4 sm:$0xff]  }
 0x617   :  { %3837 = vmatpush3.bf16.msra.mxu0 %v5242_v14  ;;  %v5922_v14 = vshrl.u32 %v5222_v60, 16 }
 0x618   :  { %3838 = vmatprep.subr.bf16.mxu0 %v5907_v22 }
 0x619   :  { %2112 = vmatpush1.bf16.msra.mxu1 %v4381_v39  ;;  %v5860_v39 = vshrl.u32 %v5222_v60, 16  ;;  %v2294_v6 = vrot.slane %v5922_v14, 1 }
 0x61a   :  { %2166 = vmatprep.subr.bf16.mxu1 %v4382_v50  ;;  %v4384_v50 = vld [vmem:[%s5825_s1 + $0x14] ss:$8 sps:$4 sm:$0xff]  }
 0x61b   :  { %3839 = vmatpush3.bf16.msra.mxu0 %v5263_v61  ;;  %v2102_v53 = vor.u32 %v5860_v39, %v2098_v2  ;;  %v5319_v2 = vld [vmem:[%s5833_s9 + $0x58] sm:$0xff]   ;;  %v5344_v39 = vld [vmem:[%s5833_s9 + $0x68] sm:$0xff]   ;;  %v5921_v61 = vshll.u32 %v5222_v60, 16 }
 0x61c   :  { %3695 = vmatmul.mubr.msk.bf16.vlgmr.msra.gmra.mrb[16].mxu1 %vm103_vm1, %v2099_v10  ;;  %3840 = vmatprep.subr.bf16.mxu0 %v5907_v22  ;;  %v5293_v10 = vld [vmem:[%s5833_s9 + $0x20] sm:$0xff]   ;;  %5913 = vst [vmem:[#allocation31_spill] sm:$0xff] %v5319_v2  ;;  %5915 = vst [vmem:[#allocation33_spill] sm:$0xff] %v5344_v39 }
 0x61d   :  { %2151 = vmatprep.mubr.bf16.mxu1 %v5908_v33  ;;  %2167 = vmatpush1.bf16.msra.mxu1 %v4383_v56  ;;  %5911 = vst [vmem:[#allocation29_spill] sm:$0xff] %v5293_v10  ;;  %v4385_v56 = vld [vmem:[%s5825_s1 + $0x10] ss:$8 sps:$4 sm:$0xff]  }
 0x61e   :  { %2168 = vmatprep.subr.bf16.mxu1 %v4384_v50  ;;  %v4386_v50 = vld [vmem:[%s5825_s1 + $0x44] ss:$8 sps:$4 sm:$0xff]  }
 0x61f   :  { %3841 = vmatpush3.bf16.msra.mxu0 %v5277_v49  ;;  %v5308_v49 = vld [vmem:[%s5833_s9 + $0x50] sm:$0xff]  }
 0x620   :  { %3842 = vmatprep.subr.bf16.mxu0 %v5907_v22  ;;  %5912 = vst [vmem:[#allocation30_spill] sm:$0xff] %v5308_v49 }
 0x621   :  { %2169 = vmatpush1.bf16.msra.mxu1 %v4385_v56  ;;  %v4387_v56 = vld [vmem:[%s5825_s1 + $0x40] ss:$8 sps:$4 sm:$0xff]  }
 0x622   :  { %2230 = vmatprep.subr.bf16.mxu1 %v4386_v50  ;;  %v4388_v50 = vld [vmem:[%s5825_s1 + $0x54] ss:$8 sps:$4 sm:$0xff]  }
 0x623   :  { %3843 = vmatpush3.bf16.msra.mxu0 %v5293_v10  ;;  %v5379_v10 = vld [vmem:[%s5833_s9 + $0xa8] sm:$0xff]  }
 0x624   :  { %3696 = vmatmul.mubr.msk.bf16.gmra.mrb[20].mxu1 %vm103_vm1, %v2102_v53  ;;  %3848 = vmatprep.subr.bf16.mxu0 %v5907_v22  ;;  %v5328_v53 = vld [vmem:[%s5833_s9 + $0x60] sm:$0xff]   ;;  %5918 = vst [vmem:[#allocation36_spill] sm:$0xff] %v5379_v10 }
 0x625   :  { %2198 = vmatprep.mubr.bf16.mxu1 %v5908_v33  ;;  %5914 = vst [vmem:[#allocation32_spill] sm:$0xff] %v5328_v53 }
 0x626   :  { %3845 = vmatmul.mubr.msk.bf16.vlgmr.msra.gmra.mrb[20].mxu0 %vm1698_vm13, %v5225_v25 }
 0x627   :  { %3849 = vmatpush3.bf16.msra.mxu0 %v5308_v49  ;;  %3858 = vmatprep.mubr.msk.bf16.mxu0 %vm4460_vm12, %v5907_v22 }
 0x628   :  { %3850 = vmatprep.subr.bf16.mxu0 %v5907_v22 }
 0x62b   :  { %3851 = vmatpush3.bf16.msra.mxu0 %v5319_v2  ;;  %v4389_v2 = vld [vmem:[%s5825_s1 + $0x50] ss:$8 sps:$4 sm:$0xff]  }
 0x62c   :  { %3697 = vmatmul.mubr.msk.bf16.vlgmr.msra.gmra.mrb[16].mxu1 %vm103_vm1, %v5214_v48  ;;  %3852 = vmatprep.subr.bf16.mxu0 %v5907_v22 }
 0x62d   :  { %2208 = vmatprep.mubr.bf16.mxu1 %v5908_v33  ;;  %2231 = vmatpush1.bf16.msra.mxu1 %v4387_v56  ;;  %v4390_v56 = vld [vmem:[%s5825_s1 + $0x64] ss:$8 sps:$4 sm:$0xff]  }
 0x62e   :  { %2232 = vmatprep.subr.bf16.mxu1 %v4388_v50  ;;  %v5357_v50 = vld [vmem:[%s5833_s9 + $0x70] sm:$0xff]  }
 0x62f   :  { %3853 = vmatpush3.bf16.msra.mxu0 %v5328_v53  ;;  %5916 = vst [vmem:[#allocation34_spill] sm:$0xff] %v5357_v50  ;;  %v2222_v53 = vrot.slane %v5222_v60, 1 }
 0x630   :  { %3854 = vmatprep.subr.bf16.mxu0 %v5907_v22 }
 0x631   :  { %2233 = vmatpush1.bf16.msra.mxu1 %v4389_v2  ;;  %v2221_v2 = vrot.slane %v5214_v48, 1 }
 0x632   :  { %2304 = vmatprep.subr.bf16.mxu1 %v4390_v56  ;;  %v5369_v56 = vld [vmem:[%s5833_s9 + $0xa0] sm:$0xff]  }
 0x633   :  { %3855 = vmatpush3.bf16.msra.mxu0 %v5344_v39  ;;  %5917 = vst [vmem:[#allocation35_spill] sm:$0xff] %v5369_v56  ;;  %v1826_v39 = vrot.slane %v5225_v25, 1  ;;  %v2223_v49 = vsel %vm247_vm3, %v2221_v2, %v2222_v53  ;;  %v4392_v2 = vld [vmem:[%s5825_s1 + $0x74] ss:$8 sps:$4 sm:$0xff]  }
 0x634   :  { %3698 = vmatmul.mubr.msk.bf16.gmra.mrb[20].mxu1 %vm103_vm1, %v5222_v60  ;;  %3856 = vmatprep.subr.bf16.mxu0 %v5907_v22 }
 0x635   :  { %2262 = vmatprep.mubr.bf16.mxu1 %v5908_v33 }
 0x637   :  { %3857 = vmatpush3.bf16.msra.mxu0 %v5357_v50 }
 0x638   :  { %3876 = vmatprep.subr.bf16.mxu0 %v5907_v22 }
 0x63a   :  { %3859 = vmatmul.mubr.msk.bf16.vlgmr.msra.gmra.mrb[24].mxu0 %vm1698_vm13, %v1826_v39  ;;  %v4391_v39 = vld [vmem:[%s5825_s1 + $0x60] ss:$8 sps:$4 sm:$0xff]  }
 0x63b   :  { %3877 = vmatpush3.bf16.msra.mxu0 %v5369_v56  ;;  %3886 = vmatprep.mubr.msk.bf16.mxu0 %vm4460_vm12, %v5907_v22  ;;  %v5920_v56 = vshrl.u32 %v5214_v48, 16 }
 0x63c   :  { %3699 = vmatmul.mubr.msk.bf16.vlgmr.msra.gmra.mrb[16].mxu1 %vm103_vm1, %v2223_v49  ;;  %3878 = vmatprep.subr.bf16.mxu0 %v5907_v22  ;;  %v5396_v49 = vld [vmem:[%s5833_s9 + $0xb0] sm:$0xff]  }
 0x63d   :  { %2272 = vmatprep.mubr.bf16.mxu1 %v5908_v33  ;;  %2305 = vmatpush1.bf16.msra.mxu1 %v4391_v39  ;;  %5919 = vst [vmem:[#allocation37_spill] sm:$0xff] %v5396_v49  ;;  %v2291_v50 = vrot.slane %v5920_v56, 1  ;;  %v2295_v39 = vrot.slane %v5921_v61, 2  ;;  %v5417_v61 = vld [vmem:[%s5833_s9 + $0xb8] sm:$0xff]  }
 0x63e   :  { %2306 = vmatprep.subr.bf16.mxu1 %v4392_v2  ;;  %v4393_v2 = vld [vmem:[%s5825_s1 + $0x70] ss:$8 sps:$4 sm:$0xff]   ;;  %5924 = vst [vmem:[#allocation38_spill] sm:$0xff] %v5417_v61 }
 0x63f   :  { %3879 = vmatpush3.bf16.msra.mxu0 %v5379_v10  ;;  %v5923_v10 = vshll.u32 %v5214_v48, 16 }
 0x640   :  { %3880 = vmatprep.subr.bf16.mxu0 %v5907_v22 }
 0x641   :  { %2307 = vmatpush1.bf16.msra.mxu1 %v4393_v2  ;;  %v2292_v0 = vrot.slane %v5923_v10, 2  ;;  %v2296_v10 = vor.u32 %v2295_v39, %v2294_v6  ;;  %v4396_v6 = vld [vmem:[%s5825_s1 + $0x94] ss:$8 sps:$4 sm:$0xff]   ;;  %v2366_v39 = vrot.slane %v5222_v60, 2 }
 0x642   :  { %2374 = vmatprep.subr.bf16.mxu1 %v4394_v51  ;;  %v5426_v51 = vld [vmem:[%s5833_s9 + $0xc0] sm:$0xff]  }
 0x643   :  { %3881 = vmatpush3.bf16.msra.mxu0 %v5396_v49  ;;  %v2293_v14 = vor.u32 %v2292_v0, %v2291_v50  ;;  %5925 = vst [vmem:[#allocation39_spill] sm:$0xff] %v5426_v51  ;;  %v4395_v0 = vld [vmem:[%s5825_s1 + $0x80] ss:$8 sps:$4 sm:$0xff]   ;;  %v2365_v50 = vrot.slane %v5214_v48, 2 }
 0x644   :  { %3700 = vmatmul.mubr.msk.bf16.gmra.mrb[20].mxu1 %vm103_vm1, %v2222_v53  ;;  %3882 = vmatprep.subr.bf16.mxu0 %v5907_v22  ;;  %v1998_v53 = vrot.slane %v5225_v25, 2  ;;  %v4397_v25 = vld [vmem:[%s5825_s1 + $0x90] ss:$8 sps:$4 sm:$0xff]  }
 0x645   :  { %2336 = vmatprep.mubr.bf16.mxu1 %v5908_v33  ;;  %v2297_v56 = vsel %vm343_vm4, %v2293_v14, %v2296_v10  ;;  %v2367_v2 = vsel %vm443_vm2, %v2365_v50, %v2366_v39 }
 0x647   :  { %3883 = vmatpush3.bf16.msra.mxu0 %v5417_v61 }
 0x648   :  { %3884 = vmatprep.subr.bf16.mxu0 %v5907_v22 }
 0x64b   :  { %3885 = vmatpush3.bf16.msra.mxu0 %v5426_v51 }
 0x64c   :  { %3701 = vmatmul.mubr.msk.bf16.vlgmr.msra.gmra.mrb[16].mxu1 %vm103_vm1, %v2297_v56 }
 0x64d   :  { %2346 = vmatprep.mubr.bf16.mxu1 %v5908_v33  ;;  %2375 = vmatpush1.bf16.msra.mxu1 %v4395_v0 }
 0x64e   :  { %3887 = vmatmul.mubr.msk.bf16.vlgmr.msra.gmra.mrb[28].mxu0 %vm1698_vm13, %v1998_v53  ;;  %2376 = vmatprep.subr.bf16.mxu1 %v4396_v6 }
 0x64f   :  { %2533 = vmatprep.mubr.bf16.mxu0 %v5908_v33 }
 0x651   :  { %2377 = vmatpush1.bf16.msra.mxu1 %v4397_v25 }
 0x654   :  { %3702 = vmatmul.mubr.msk.bf16.gmra.mrb[20].mxu1 %vm103_vm1, %v2296_v10 }
 0x655   :  { %2406 = vmatprep.mubr.bf16.mxu1 %v5908_v33 }
 0x65c   :  { %3703 = vmatmul.mubr.msk.bf16.vlgmr.msra.gmra.mrb[16].mxu1 %vm103_vm1, %v2367_v2 }
 0x65d   :  { %2416 = vmatprep.mubr.bf16.mxu1 %v5908_v33 }
 0x664   :  { %3704 = vmatmul.mubr.msk.bf16.gmra.mrb[20].mxu1 %vm103_vm1, %v2366_v39 }
 0x665   :  { %2913 = vmatprep.mubr.bf16.mxu1 %v5908_v33 }
 0x6e5   :  { %v1736_v14 = vpop.f32.mrb[16].mxu0 }
 0x6e6   :  { %v3832_v56 = vpop.f32.mrb[17].mxu0 }
 0x6e7   :  { %v1739_v53 = vpop.f32.mrb[18].mxu0  ;;  %v1980_v10 = vpop.f32.mrb[12].mxu1 }
 0x6e8   :  { %v3833_v0 = vpop.f32.mrb[19].mxu0  ;;  %v3874_v6 = vpop.f32.mrb[13].mxu1 }
 0x6e9   :  { %v1983_v25 = vpop.f32.mrb[14].mxu1 }
 0x6ea   :  { %v3875_v48 = vpop.f32.mrb[15].mxu1 }
 0x6f9   :  { %v1808_v51 = vpop.f32.mrb[20].mxu0 }
 0x6fa   :  { %v1809_v60 = vadd.f32 %v1808_v51, %v1736_v14  ;;  %v3846_v61 = vpop.f32.mrb[21].mxu0 }
 0x6fb   :  { %v1811_v50 = vpop.f32.mrb[22].mxu0 }
 0x6fc   :  { %v3847_v49 = vpop.f32.mrb[23].mxu0 }
 0x70d   :  { %v1894_v2 = vpop.f32.mrb[24].mxu0 }
 0x70e   :  { %v1900_v63 = vadd.f32 %v1894_v2, %v1809_v60  ;;  %v3860_v62 = vpop.f32.mrb[25].mxu0 }
 0x70f   :  { %v1897_v47 = vpop.f32.mrb[26].mxu0 }
 0x710   :  { %v3861_v39 = vpop.f32.mrb[27].mxu0  ;;  %v1986_v46 = vadd.f32 %v1980_v10, %v1900_v63 }
 0x721   :  { %v2066_v58 = vpop.f32.mrb[28].mxu0 }
 0x722   :  { %v5454_v52 = vadd.f32 %v2066_v58, %v1986_v46  ;;  %v3888_v56 = vpop.f32.mrb[29].mxu0 }
 0x723   :  { %v2069_v53 = vpop.f32.mrb[30].mxu0 }
 0x724   :  { %v3889_v0 = vpop.f32.mrb[31].mxu0 }
 0x72f   :  { %v2408_v6 = vpop.f32.mrb[16].mxu1 }
 0x730   :  { %v2435_v25 = vadd.f32 %v2408_v6, %v4660_v54  ;;  %v2410_v48 = vpop.f32.mrb[17].mxu1 }
 0x731   :  { %v2436_v61 = vadd.f32 %v2410_v48, %v4664_v55  ;;  %v2412_v51 = vpop.f32.mrb[18].mxu1 }
 0x732   :  { %v2443_v49 = vsub.f32 0.0, %v2435_v25  ;;  %v2437_v14 = vadd.f32 %v2412_v51, %v4660_v54  ;;  %v2414_v62 = vpop.f32.mrb[19].mxu1 }
 0x733   :  { %v2444_v47 = vsub.f32 0.0, %v2436_v61  ;;  %v2438_v63 = vadd.f32 %v2414_v62, %v4664_v55 }
 0x734   :  { %v2451_v10 = vmul.f32 1.442695, %v2443_v49  ;;  %v2445_v46 = vsub.f32 0.0, %v2437_v14 }
 0x735   :  { %v2453_v58 = vmul.f32 1.442695, %v2444_v47  ;;  %v2446_v60 = vsub.f32 0.0, %v2438_v63 }
 0x736   :  { %4320 = vpow2.f32 %v2451_v10  ;;  %v2455_v50 = vmul.f32 1.442695, %v2445_v46 }
 0x737   :  { %v2457_v2 = vmul.f32 1.442695, %v2446_v60  ;;  %v2418_v39 = vpop.f32.mrb[20].mxu1  ;;  %4322 = vpow2.f32 %v2453_v58 }
 0x738   :  { %v2439_v56 = vadd.f32 %v2418_v39, %v4660_v54  ;;  %v2420_v53 = vpop.f32.mrb[21].mxu1  ;;  %4324 = vpow2.f32 %v2455_v50 }
 0x739   :  { %v2440_v0 = vadd.f32 %v2420_v53, %v4664_v55  ;;  %v2422_v6 = vpop.f32.mrb[22].mxu1  ;;  %4326 = vpow2.f32 %v2457_v2 }
 0x73a   :  { %v2447_v25 = vsub.f32 0.0, %v2439_v56  ;;  %v2441_v48 = vadd.f32 %v2422_v6, %v4660_v54  ;;  %v2424_v61 = vpop.f32.mrb[23].mxu1 }
 0x73b   :  { %v2448_v51 = vsub.f32 0.0, %v2440_v0  ;;  %v2442_v49 = vadd.f32 %v2424_v61, %v4664_v55 }
 0x73c   :  { %v2459_v14 = vmul.f32 1.442695, %v2447_v25  ;;  %v2449_v62 = vsub.f32 0.0, %v2441_v48 }
 0x73d   :  { %v2461_v47 = vmul.f32 1.442695, %v2448_v51  ;;  %v2450_v63 = vsub.f32 0.0, %v2442_v49 }
 0x73e   :  { %4328 = vpow2.f32 %v2459_v14  ;;  %v2463_v10 = vmul.f32 1.442695, %v2449_v62 }
 0x73f   :  { %4330 = vpow2.f32 %v2461_v47  ;;  %v2465_v46 = vmul.f32 1.442695, %v2450_v63 }
 0x740   :  { %v4321_v58 = vpop.eup %4320  ;;  %4332 = vpow2.f32 %v2463_v10 }
 0x741   :  { %v2467_v60 = vadd.f32 1.0, %v4321_v58  ;;  %4334 = vpow2.f32 %v2465_v46  ;;  %v4323_v50 = vpop.eup %4322 }
 0x742   :  { %v4325_v2 = vpop.eup %4324  ;;  %v2468_v39 = vadd.f32 1.0, %v4323_v50 }
 0x743   :  { %v4327_v54 = vpop.eup %4326  ;;  %4336 = vrcp.f32 %v2467_v60  ;;  %v2469_v56 = vadd.f32 1.0, %v4325_v2 }
 0x744   :  { %4338 = vrcp.f32 %v2468_v39  ;;  %v2470_v55 = vadd.f32 1.0, %v4327_v54 }
 0x745   :  { %4340 = vrcp.f32 %v2469_v56 }
 0x746   :  { %4342 = vrcp.f32 %v2470_v55  ;;  %v4398_v55 = vld [vmem:[%s5827_s3] sm:$0x7f]  }
 0x748   :  { %v4329_v53 = vpop.eup %4328 }
 0x749   :  { %v4331_v0 = vpop.eup %4330  ;;  %v2471_v6 = vadd.f32 1.0, %v4329_v53  ;;  %v4399_v53 = vld [vmem:[%s5828_s4] sm:$0xff]  }
 0x74a   :  { %v4333_v25 = vpop.eup %4332  ;;  %v2472_v48 = vadd.f32 1.0, %v4331_v0  ;;  %v4400_v0 = vld [vmem:[%s5828_s4 + $0x8] sm:$0xff]  }
 0x74b   :  { %v4335_v61 = vpop.eup %4334  ;;  %4344 = vrcp.f32 %v2471_v6  ;;  %v2473_v51 = vadd.f32 1.0, %v4333_v25  ;;  %v4401_v6 = vld [vmem:[%s5828_s4 + $0x10] sm:$0xff]   ;;  %v4402_v25 = vld [vmem:[%s5828_s4 + $0x18] sm:$0xff]  }
 0x74c   :  { %4346 = vrcp.f32 %v2472_v48  ;;  %v2474_v49 = vadd.f32 1.0, %v4335_v61  ;;  %v4403_v48 = vld [vmem:[%s5828_s4 + $0x20] sm:$0xff]   ;;  %v4404_v61 = vld [vmem:[%s5828_s4 + $0x28] sm:$0xff]  }
 0x74d   :  { %4348 = vrcp.f32 %v2473_v51  ;;  %v4337_v14 = vpop.eup %4336  ;;  %v4405_v51 = vld [vmem:[%s5828_s4 + $0x30] sm:$0xff]  }
 0x74e   :  { %4350 = vrcp.f32 %v2474_v49  ;;  %v4339_v62 = vpop.eup %4338  ;;  %v4406_v49 = vld [vmem:[%s5828_s4 + $0x38] sm:$0xff]  }
 0x74f   :  { %v4341_v47 = vpop.eup %4340 }
 0x750   :  { %v4343_v63 = vpop.eup %4342  ;;  %v2491_v10 = vpack.c.bf16 %v4341_v47, %v4337_v14  ;;  %v4407_v14 = vld [vmem:[%s5828_s4 + $0x40] sm:$0xff]  }
 0x751   :  { %v2492_v46 = vpack.c.bf16 %v4343_v63, %v4339_v62  ;;  %v4408_v62 = vld [vmem:[%s5828_s4 + $0x48] sm:$0xff]   ;;  %v4409_v47 = vld [vmem:[%s5829_s5 + $0x5c] ss:$8 sps:$4 sm:$0xff]  }
 0x753   :  { %2501 = vmatprep.subr.bf16.mxu0 %v2492_v46 }
 0x754   :  { %2502 = vmatpush1.bf16.msra.mxu0 %v2491_v10 }
 0x755   :  { %v4345_v58 = vpop.eup %4344 }
 0x756   :  { %v4347_v60 = vpop.eup %4346 }
 0x757   :  { %v4349_v50 = vpop.eup %4348 }
 0x758   :  { %v4351_v2 = vpop.eup %4350  ;;  %v2493_v39 = vpack.c.bf16 %v4349_v50, %v4345_v58 }
 0x759   :  { %v2494_v54 = vpack.c.bf16 %v4351_v2, %v4347_v60  ;;  %v4410_v2 = vld [vmem:[%s5829_s5 + $0x58] ss:$8 sps:$4 sm:$0xff]  }
 0x75a   :  { %v2496_v56 = vsel %vm443_vm2, %v2493_v39, 0  ;;  %v4412_v39 = vld [vmem:[%s5829_s5 + $0x68] ss:$8 sps:$4 sm:$0xff]  }
 0x75b   :  { %3705 = vmatprep.subr.msk.bf16.mxu0 %vm443_vm2, %v2494_v54  ;;  %v4413_v54 = vld [vmem:[%s5829_s5 + $0x7c] ss:$8 sps:$4 sm:$0xff]  }
 0x75c   :  { %2504 = vmatpush1.bf16.msra.mxu0 %v2496_v56  ;;  %v4414_v56 = vld [vmem:[%s5829_s5 + $0x78] ss:$8 sps:$4 sm:$0xff]  }
 0x75d   :  { %2549 = vmatprep.subr.bf16.mxu0 %v5908_v33 }
 0x75f   :  { %3706 = vmatmul.mubr.msk.bf16.vlgmr.msra.gmra.mrb[32].mxu0 %vm613_vm5, %v4398_v55  ;;  %v4415_v55 = vld [vmem:[%s5829_s5 + $0x8c] ss:$8 sps:$4 sm:$0xff]  }
 0x760   :  { %2550 = vmatpush1.bf16.msra.mxu0 %v4399_v53  ;;  %v4416_v53 = vld [vmem:[%s5829_s5 + $0x88] ss:$8 sps:$4 sm:$0xff]  }
 0x761   :  { %2551 = vmatprep.subr.bf16.mxu0 %v5908_v33 }
 0x764   :  { %2552 = vmatpush1.bf16.msra.mxu0 %v4400_v0  ;;  %v4417_v0 = vld [vmem:[%s5829_s5 + $0x9c] ss:$8 sps:$4 sm:$0xff]  }
 0x765   :  { %2553 = vmatprep.subr.bf16.mxu0 %v5908_v33 }
 0x768   :  { %2554 = vmatpush1.bf16.msra.mxu0 %v4401_v6  ;;  %v4418_v6 = vld [vmem:[%s5829_s5 + $0x98] ss:$8 sps:$4 sm:$0xff]  }
 0x769   :  { %2555 = vmatprep.subr.bf16.mxu0 %v5908_v33 }
 0x76c   :  { %2556 = vmatpush1.bf16.msra.mxu0 %v4402_v25  ;;  %v4419_v25 = vld [vmem:[%s5829_s5 + $0x4] ss:$8 sps:$4 sm:$0xff]  }
 0x76d   :  { %2557 = vmatprep.subr.bf16.mxu0 %v5908_v33 }
 0x770   :  { %2558 = vmatpush1.bf16.msra.mxu0 %v4403_v48 }
 0x771   :  { %2559 = vmatprep.subr.bf16.mxu0 %v5908_v33 }
 0x774   :  { %2560 = vmatpush1.bf16.msra.mxu0 %v4404_v61 }
 0x775   :  { %2561 = vmatprep.subr.bf16.mxu0 %v5908_v33 }
 0x778   :  { %2562 = vmatpush1.bf16.msra.mxu0 %v4405_v51 }
 0x779   :  { %2563 = vmatprep.subr.bf16.mxu0 %v5908_v33 }
 0x77c   :  { %2564 = vmatpush1.bf16.msra.mxu0 %v4406_v49 }
 0x77d   :  { %2565 = vmatprep.subr.bf16.mxu0 %v5908_v33 }
 0x780   :  { %2566 = vmatpush1.bf16.msra.mxu0 %v4407_v14 }
 0x781   :  { %2567 = vmatprep.subr.bf16.mxu0 %v5908_v33 }
 0x784   :  { %2568 = vmatpush1.bf16.msra.mxu0 %v4408_v62 }
 0x785   :  { %2569 = vmatprep.subr.bf16.mxu0 %v5908_v33 }
 0x788   :  { %2570 = vmatpush1.bf16.msra.mxu0 %v4725_v8  ;;  %v4411_v8 = vld [vmem:[%s5829_s5 + $0x6c] ss:$8 sps:$4 sm:$0xff]  }
 0x789   :  { %2601 = vmatprep.subr.bf16.mxu0 %v4409_v47 }
 0x832   :  { %v2535_v63 = vpop.f32.mrb[32].mxu0 }
 0x833   :  { %v2537_v10 = vpop.f32.mrb[33].mxu0 }
 0x834   :  { %v2539_v46 = vpop.f32.mrb[34].mxu0 }
 0x835   :  { %v2544_v58 = vpack.c.bf16 %v2539_v46, %v2535_v63  ;;  %v2541_v60 = vpop.f32.mrb[35].mxu0 }
 0x836   :  { %v2545_v50 = vpack.c.bf16 %v2541_v60, %v2537_v10  ;;  %v4421_v60 = vld [vmem:[%s5829_s5 + $0x14] ss:$8 sps:$4 sm:$0xff]  }
 0x838   :  { %3707 = vmatprep.mubr.msk.bf16.mxu0 %vm753_vm7, %v2545_v50  ;;  %v4422_v50 = vld [vmem:[%s5829_s5 + $0x10] ss:$8 sps:$4 sm:$0xff]  }
 0x839   :  { %2582 = vmatmul.mubr.bf16.vlgmr.msra.gmra.mrb[36].mxu0 %v2544_v58  ;;  %v4420_v58 = vld [vmem:[%s5829_s5] ss:$8 sps:$4 sm:$0xff]  }
 0x83a   :  { %2602 = vmatpush1.bf16.msra.mxu0 %v4410_v2  ;;  %2633 = vmatprep.mubr.bf16.mxu0 %v5908_v33  ;;  %v4423_v2 = vld [vmem:[%s5829_s5 + $0x24] ss:$8 sps:$4 sm:$0xff]  }
 0x83b   :  { %2603 = vmatprep.subr.bf16.mxu0 %v4411_v8  ;;  %v4424_v8 = vld [vmem:[%s5829_s5 + $0x20] ss:$8 sps:$4 sm:$0xff]  }
 0x83e   :  { %2604 = vmatpush1.bf16.msra.mxu0 %v4412_v39  ;;  %v4425_v39 = vld [vmem:[%s5829_s5 + $0x34] ss:$8 sps:$4 sm:$0xff]  }
 0x83f   :  { %2605 = vmatprep.subr.bf16.mxu0 %v4413_v54  ;;  %v4426_v54 = vld [vmem:[%s5829_s5 + $0x30] ss:$8 sps:$4 sm:$0xff]  }
 0x842   :  { %2606 = vmatpush1.bf16.msra.mxu0 %v4414_v56  ;;  %v4427_v56 = vld [vmem:[%s5829_s5 + $0x44] ss:$8 sps:$4 sm:$0xff]  }
 0x843   :  { %2607 = vmatprep.subr.bf16.mxu0 %v4415_v55  ;;  %v4428_v55 = vld [vmem:[%s5829_s5 + $0x40] ss:$8 sps:$4 sm:$0xff]  }
 0x846   :  { %2608 = vmatpush1.bf16.msra.mxu0 %v4416_v53  ;;  %v4429_v53 = vld [vmem:[%s5829_s5 + $0xb4] ss:$8 sps:$4 sm:$0xff]  }
 0x847   :  { %2609 = vmatprep.subr.bf16.mxu0 %v4417_v0  ;;  %v4430_v0 = vld [vmem:[%s5829_s5 + $0xb0] ss:$8 sps:$4 sm:$0xff]  }
 0x84a   :  { %2610 = vmatpush1.bf16.msra.mxu0 %v4418_v6  ;;  %v4433_v6 = vld [vmem:[%s5829_s5 + $0xd4] ss:$8 sps:$4 sm:$0xff]  }
 0x84b   :  { %3708 = vmatprep.subr.msk.bf16.mxu0 %vm892_vm8, %v4763_v26 }
 0x84e   :  { %2612 = vmatpush1.bf16.msra.mxu0 %v4771_v29 }
 0x84f   :  { %2646 = vmatprep.subr.bf16.mxu0 %v4419_v25 }
 0x90c   :  { %v2583_v48 = vpop.f32.mrb[36].mxu0 }
 0x90d   :  { %v2585_v61 = vpop.f32.mrb[37].mxu0 }
 0x90e   :  { %v2586_v51 = vpop.f32.mrb[38].mxu0 }
 0x90f   :  { %v5550_v49 = vpack.c.bf16 %v2586_v51, %v2583_v48  ;;  %v2588_v14 = vpop.f32.mrb[39].mxu0  ;;  %v5930_v51 = vld [vmem:[#allocation7_spill] sm:$0xff] }
 0x910   :  { %v5932_v14 = vld [vmem:[#allocation9_spill] sm:$0xff] }
 0x911   :  { %v2592_v62 = vshrl.u32 %v5550_v49, 16  ;;  %v2594_v47 = vshll.u32 %v5550_v49, 16  ;;  %v2690_v25 = vrot.slane %v5550_v49, 1 }
 0x913   :  { %v2596_v63 = vrot.slane %v2594_v47, 1  ;;  %v2741_v10 = vrot.slane %v2592_v62, 1  ;;  %v2742_v26 = vrot.slane %v2594_v47, 2  ;;  %v5934_v47 = vld [vmem:[#allocation11_spill] sm:$0xff] }
 0x915   :  { %v2597_v46 = vor.u32 %v2596_v63, %v2592_v62  ;;  %v2743_v29 = vor.u32 %v2742_v26, %v2741_v10  ;;  %v5933_v62 = vld [vmem:[#allocation10_spill] sm:$0xff]  ;;  %v5935_v63 = vld [vmem:[#allocation12_spill] sm:$0xff]  ;;  %v5936_v10 = vld [vmem:[#allocation13_spill] sm:$0xff] }
 0x916   :  { %v5937_v26 = vld [vmem:[#allocation14_spill] sm:$0xff] }
 0x917   :  { %3709 = vmatmul.mubr.msk.bf16.vlgmr.msra.gmra.mrb[40].mxu0 %vm888_vm9, %v2597_v46  ;;  %v5938_v46 = vld [vmem:[#allocation15_spill] sm:$0xff] }
 0x918   :  { %2647 = vmatpush1.bf16.msra.mxu0 %v4420_v58  ;;  %2678 = vmatprep.mubr.bf16.mxu0 %v5908_v33  ;;  %v5940_v58 = vld [vmem:[#allocation17_spill] sm:$0xff] }
 0x919   :  { %2648 = vmatprep.subr.bf16.mxu0 %v4421_v60 }
 0x91c   :  { %2649 = vmatpush1.bf16.msra.mxu0 %v4422_v50 }
 0x91d   :  { %2650 = vmatprep.subr.bf16.mxu0 %v4423_v2 }
 0x920   :  { %2651 = vmatpush1.bf16.msra.mxu0 %v4424_v8 }
 0x921   :  { %2652 = vmatprep.subr.bf16.mxu0 %v4425_v39 }
 0x924   :  { %2653 = vmatpush1.bf16.msra.mxu0 %v4426_v54 }
 0x925   :  { %2654 = vmatprep.subr.bf16.mxu0 %v4427_v56  ;;  %v5941_v56 = vld [vmem:[#allocation18_spill] sm:$0xff] }
 0x928   :  { %2655 = vmatpush1.bf16.msra.mxu0 %v4428_v55  ;;  %v5943_v55 = vld [vmem:[#allocation20_spill] sm:$0xff] }
 0x929   :  { %3710 = vmatprep.subr.msk.bf16.mxu0 %vm892_vm8, %v4816_v57  ;;  %v4431_v57 = vld [vmem:[%s5829_s5 + $0xc4] ss:$8 sps:$4 sm:$0xff]  }
 0x92c   :  { %2657 = vmatpush1.bf16.msra.mxu0 %v4821_v59  ;;  %v4432_v59 = vld [vmem:[%s5829_s5 + $0xc0] ss:$8 sps:$4 sm:$0xff]  }
 0x92d   :  { %2694 = vmatprep.subr.bf16.mxu0 %v4429_v53  ;;  %v5944_v53 = vld [vmem:[#allocation21_spill] sm:$0xff] }
 0x92f   :  { %3711 = vmatmul.mubr.msk.bf16.vlgmr.msra.gmra.mrb[40].mxu0 %vm888_vm9, %v5550_v49 }
 0x930   :  { %2695 = vmatpush1.bf16.msra.mxu0 %v4430_v0  ;;  %2726 = vmatprep.mubr.bf16.mxu0 %v5908_v33  ;;  %v5945_v0 = vld [vmem:[#allocation23_spill] sm:$0xff] }
 0x931   :  { %2696 = vmatprep.subr.bf16.mxu0 %v4431_v57 }
 0x934   :  { %2697 = vmatpush1.bf16.msra.mxu0 %v4432_v59 }
 0x935   :  { %2698 = vmatprep.subr.bf16.mxu0 %v4433_v6 }
 0x938   :  { %2699 = vmatpush1.bf16.msra.mxu0 %v4845_v1  ;;  %v2794_v1 = vrot.slane %v5550_v49, 2  ;;  %v5931_v49 = vld [vmem:[#allocation8_spill] sm:$0xff] }
 0x939   :  { %2700 = vmatprep.subr.bf16.mxu0 %v4850_v3  ;;  %v5926_v3 = vld [vmem:[#allocation22_spill] sm:$0xff] }
 0x93c   :  { %2701 = vmatpush1.bf16.msra.mxu0 %v4856_v4  ;;  %v5927_v4 = vld [vmem:[#allocation24_spill] sm:$0xff] }
 0x93d   :  { %2702 = vmatprep.subr.bf16.mxu0 %v4862_v5 }
 0x940   :  { %2703 = vmatpush1.bf16.msra.mxu0 %v4871_v7  ;;  %v5928_v7 = vld [vmem:[#allocation5_spill] sm:$0xff] }
 0x941   :  { %3712 = vmatprep.subr.msk.bf16.mxu0 %vm892_vm8, %v4874_v9 }
 0x944   :  { %2705 = vmatpush1.bf16.msra.mxu0 %v4880_v11 }
 0x945   :  { %2747 = vmatprep.subr.bf16.mxu0 %v4885_v12  ;;  %v5929_v12 = vld [vmem:[#allocation6_spill] sm:$0xff] }
 0x947   :  { %3713 = vmatmul.mubr.msk.bf16.vlgmr.msra.gmra.mrb[40].mxu0 %vm888_vm9, %v2690_v25 }
 0x948   :  { %2748 = vmatpush1.bf16.msra.mxu0 %v4891_v13  ;;  %2779 = vmatprep.mubr.bf16.mxu0 %v5908_v33 }
 0x949   :  { %2749 = vmatprep.subr.bf16.mxu0 %v4898_v15 }
 0x94c   :  { %2750 = vmatpush1.bf16.msra.mxu0 %v4905_v16 }
 0x94d   :  { %2751 = vmatprep.subr.bf16.mxu0 %v4912_v17 }
 0x950   :  { %2752 = vmatpush1.bf16.msra.mxu0 %v4918_v18 }
 0x951   :  { %2753 = vmatprep.subr.bf16.mxu0 %v4924_v19 }
 0x954   :  { %2754 = vmatpush1.bf16.msra.mxu0 %v4930_v20 }
 0x955   :  { %2755 = vmatprep.subr.bf16.mxu0 %v4936_v21 }
 0x958   :  { %2756 = vmatpush1.bf16.msra.mxu0 %v4945_v23 }
 0x959   :  { %3714 = vmatprep.subr.msk.bf16.mxu0 %vm892_vm8, %v4948_v24 }
 0x95c   :  { %2758 = vmatpush1.bf16.msra.mxu0 %v4954_v27 }
 0x95d   :  { %2798 = vmatprep.subr.bf16.mxu0 %v4959_v28 }
 0x95f   :  { %3715 = vmatmul.mubr.msk.bf16.vlgmr.msra.gmra.mrb[40].mxu0 %vm888_vm9, %v2743_v29  ;;  %v5939_v29 = vld [vmem:[#allocation16_spill] sm:$0xff] }
 0x960   :  { %2799 = vmatpush1.bf16.msra.mxu0 %v4965_v30  ;;  %2830 = vmatprep.mubr.bf16.mxu0 %v5908_v33 }
 0x961   :  { %2800 = vmatprep.subr.bf16.mxu0 %v4971_v31 }
 0x964   :  { %2801 = vmatpush1.bf16.msra.mxu0 %v4981_v32 }
 0x965   :  { %2802 = vmatprep.subr.bf16.mxu0 %v4988_v34 }
 0x968   :  { %2803 = vmatpush1.bf16.msra.mxu0 %v4994_v35 }
 0x969   :  { %2804 = vmatprep.subr.bf16.mxu0 %v5000_v36 }
 0x96c   :  { %2805 = vmatpush1.bf16.msra.mxu0 %v5006_v37 }
 0x96d   :  { %2806 = vmatprep.subr.bf16.mxu0 %v5012_v38 }
 0x970   :  { %2807 = vmatpush1.bf16.msra.mxu0 %v5021_v40 }
 0x971   :  { %3716 = vmatprep.subr.msk.bf16.mxu0 %vm892_vm8, %v5024_v41 }
 0x974   :  { %2809 = vmatpush1.bf16.msra.mxu0 %v5030_v43 }
 0x975   :  { %3932 = vmatprep.subr.bf16.mxu0 %v5907_v22 }
 0x977   :  { %3717 = vmatmul.mubr.msk.bf16.vlgmr.msra.gmra.mrb[40].mxu0 %vm888_vm9, %v2794_v1 }
 0x978   :  { %3933 = vmatpush3.bf16.msra.mxu0 %v5134_v42  ;;  %3942 = vmatprep.mubr.msk.bf16.mxu0 %vm4460_vm12, %v5907_v22 }
 0x979   :  { %3934 = vmatprep.subr.bf16.mxu0 %v5907_v22 }
 0x97c   :  { %3935 = vmatpush3.bf16.msra.mxu0 %v5141_v44 }
 0x97d   :  { %3936 = vmatprep.subr.bf16.mxu0 %v5907_v22 }
 0x980   :  { %3937 = vmatpush3.bf16.msra.mxu0 %v5148_v45 }
 0x981   :  { %3938 = vmatprep.subr.bf16.mxu0 %v5907_v22 }
 0x984   :  { %3939 = vmatpush3.bf16.msra.mxu0 %v5926_v3 }
 0x985   :  { %3940 = vmatprep.subr.bf16.mxu0 %v5907_v22 }
 0x988   :  { %3941 = vmatpush3.bf16.msra.mxu0 %v5927_v4 }
 0x989   :  { %3960 = vmatprep.subr.bf16.mxu0 %v5907_v22 }
 0xa4a   :  { %v2832_v5 = vpop.f32.mrb[40].mxu0 }
 0xa4b   :  { %v2845_v9 = vadd.f32 %v2832_v5, %v5928_v7  ;;  %v2834_v11 = vpop.f32.mrb[41].mxu0  ;;  %v5946_v5 = vld [vmem:[#allocation25_spill] sm:$0xff] }
 0xa4c   :  { %v2846_v13 = vadd.f32 %v2834_v11, %v5929_v12  ;;  %v2836_v15 = vpop.f32.mrb[42].mxu0  ;;  %v5949_v11 = vld [vmem:[#allocation28_spill] sm:$0xff] }
 0xa4d   :  { %v2849_v16 = vsub.f32 0.0, %v2845_v9  ;;  %v2847_v17 = vadd.f32 %v2836_v15, %v5928_v7  ;;  %v2838_v18 = vpop.f32.mrb[43].mxu0  ;;  %v5947_v7 = vld [vmem:[#allocation26_spill] sm:$0xff]  ;;  %v5948_v9 = vld [vmem:[#allocation27_spill] sm:$0xff] }
 0xa4e   :  { %v2850_v19 = vsub.f32 0.0, %v2846_v13  ;;  %v2848_v20 = vadd.f32 %v2838_v18, %v5929_v12  ;;  %v5950_v12 = vld [vmem:[#allocation29_spill] sm:$0xff]  ;;  %v5951_v13 = vld [vmem:[#allocation30_spill] sm:$0xff]  ;;  %v5952_v15 = vld [vmem:[#allocation31_spill] sm:$0xff] }
 0xa4f   :  { %v2853_v21 = vmul.f32 1.442695, %v2849_v16  ;;  %v2851_v23 = vsub.f32 0.0, %v2847_v17  ;;  %v5953_v16 = vld [vmem:[#allocation32_spill] sm:$0xff]  ;;  %v5954_v17 = vld [vmem:[#allocation33_spill] sm:$0xff]  ;;  %v5955_v18 = vld [vmem:[#allocation34_spill] sm:$0xff] }
 0xa50   :  { %v2855_v24 = vmul.f32 1.442695, %v2850_v19  ;;  %v2852_v27 = vsub.f32 0.0, %v2848_v20  ;;  %v5956_v20 = vld [vmem:[#allocation35_spill] sm:$0xff] }
 0xa51   :  { %4352 = vpow2.f32 %v2853_v21  ;;  %v2857_v28 = vmul.f32 1.442695, %v2851_v23  ;;  %v5957_v21 = vld [vmem:[#allocation36_spill] sm:$0xff]  ;;  %v5958_v23 = vld [vmem:[#allocation37_spill] sm:$0xff] }
 0xa52   :  { %4354 = vpow2.f32 %v2855_v24  ;;  %v2859_v30 = vmul.f32 1.442695, %v2852_v27  ;;  %v5959_v24 = vld [vmem:[#allocation38_spill] sm:$0xff]  ;;  %v5960_v27 = vld [vmem:[#allocation39_spill] sm:$0xff] }
 0xa53   :  { %4356 = vpow2.f32 %v2857_v28 }
 0xa54   :  { %4358 = vpow2.f32 %v2859_v30  ;;  %v4258_v30 = vld [vmem:[%s5835_s11] sm:$0xff]  }
 0xa5b   :  { %v4353_v31 = vpop.eup %4352 }
 0xa5c   :  { %v4355_v32 = vpop.eup %4354  ;;  %v2861_v34 = vadd.f32 1.0, %v4353_v31  ;;  %v4259_v31 = vld [vmem:[%s5835_s11 + $0x8] sm:$0xff]  }
 0xa5d   :  { %v4357_v35 = vpop.eup %4356  ;;  %v2862_v36 = vadd.f32 1.0, %v4355_v32  ;;  %v4260_v32 = vld [vmem:[%s5835_s11 + $0x10] sm:$0xff]  }
 0xa5e   :  { %v4359_v37 = vpop.eup %4358  ;;  %4360 = vrcp.f32 %v2861_v34  ;;  %v2863_v38 = vadd.f32 1.0, %v4357_v35  ;;  %v4261_v34 = vld [vmem:[%s5835_s11 + $0x18] sm:$0xff]   ;;  %v4262_v35 = vld [vmem:[%s5835_s11 + $0x20] sm:$0xff]  }
 0xa5f   :  { %4362 = vrcp.f32 %v2862_v36  ;;  %v2864_v40 = vadd.f32 1.0, %v4359_v37  ;;  %v4263_v36 = vld [vmem:[%s5835_s11 + $0x28] sm:$0xff]   ;;  %v4264_v37 = vld [vmem:[%s5835_s11 + $0x30] sm:$0xff]  }
 0xa60   :  { %4364 = vrcp.f32 %v2863_v38  ;;  %v4265_v38 = vld [vmem:[%s5835_s11 + $0x38] ss:$0 sps:$4 sm:$0xff]  }
 0xa61   :  { %4366 = vrcp.f32 %v2864_v40  ;;  %v3277_v40 = vsel %vm757_vm6, %v4265_v38, 0 }
 0xa68   :  { %v4361_v41 = vpop.eup %4360 }
 0xa69   :  { %v4363_v43 = vpop.eup %4362 }
 0xa6a   :  { %v4365_v42 = vpop.eup %4364 }
 0xa6b   :  { %v4367_v44 = vpop.eup %4366  ;;  %v2873_v45 = vpack.c.bf16 %v4365_v42, %v4361_v41  ;;  %v4266_v41 = vld [vmem:[%s5837_s13] sm:$0xff]  }
 0xa6c   :  { %v2874_v48 = vpack.c.bf16 %v4367_v44, %v4363_v43  ;;  %v4267_v43 = vld [vmem:[%s5837_s13 + $0x8] sm:$0xff]  }
 0xa6d   :  { %v2876_v61 = vsel %vm1470_vm10, %v2873_v45, 0 }
 0xa6e   :  { %3718 = vmatprep.subr.msk.bf16.mxu1 %vm1470_vm10, %v2874_v48 }
 0xa6f   :  { %2882 = vmatpush1.bf16.msra.mxu1 %v2876_v61 }
 0xa70   :  { %2927 = vmatprep.subr.bf16.mxu1 %v5908_v33 }
 0xa72   :  { %3719 = vmatmul.mubr.msk.bf16.vlgmr.msra.gmra.mrb[24].mxu1 %vm1466_vm11, %v5930_v51 }
 0xa73   :  { %2928 = vmatpush1.bf16.msra.mxu1 %v5931_v49 }
 0xa74   :  { %2929 = vmatprep.subr.bf16.mxu1 %v5908_v33 }
 0xa77   :  { %2930 = vmatpush1.bf16.msra.mxu1 %v5932_v14 }
 0xa78   :  { %2931 = vmatprep.subr.bf16.mxu1 %v5908_v33 }
 0xa7b   :  { %2932 = vmatpush1.bf16.msra.mxu1 %v5933_v62 }
 0xa7c   :  { %2933 = vmatprep.subr.bf16.mxu1 %v5908_v33 }
 0xa7f   :  { %2934 = vmatpush1.bf16.msra.mxu1 %v5934_v47 }
 0xa80   :  { %2935 = vmatprep.subr.bf16.mxu1 %v5908_v33 }
 0xa83   :  { %2936 = vmatpush1.bf16.msra.mxu1 %v5935_v63 }
 0xa84   :  { %2937 = vmatprep.subr.bf16.mxu1 %v5908_v33 }
 0xa87   :  { %2938 = vmatpush1.bf16.msra.mxu1 %v5936_v10 }
 0xa88   :  { %2939 = vmatprep.subr.bf16.mxu1 %v5908_v33 }
 0xa8b   :  { %2940 = vmatpush1.bf16.msra.mxu1 %v5937_v26 }
 0xa8c   :  { %2941 = vmatprep.subr.bf16.mxu1 %v5908_v33 }
 0xa8f   :  { %2942 = vmatpush1.bf16.msra.mxu1 %v5938_v46 }
 0xa90   :  { %2943 = vmatprep.subr.bf16.mxu1 %v5908_v33 }
 0xa93   :  { %2944 = vmatpush1.bf16.msra.mxu1 %v5939_v29 }
 0xa94   :  { %2945 = vmatprep.subr.bf16.mxu1 %v5908_v33  ;;  %v5942_v33 = vld [vmem:[#allocation19_spill] sm:$0xff] }
 0xa97   :  { %2946 = vmatpush1.bf16.msra.mxu1 %v5940_v58 }
 0xa98   :  { %3890 = vmatprep.subr.bf16.mxu1 %v5907_v22 }
 0xb45   :  { %v2915_v60 = vpop.f32.mrb[24].mxu1 }
 0xb46   :  { %v2917_v50 = vpop.f32.mrb[25].mxu1  ;;  %v2922_v39 = vpack.c.bf16 %v2915_v60, %v2915_v60 }
 0xb47   :  { %v2923_v2 = vpack.c.bf16 %v2917_v50, %v2917_v50  ;;  %v2919_v8 = vpop.f32.mrb[26].mxu1 }
 0xb48   :  { %v2920_v54 = vpop.f32.mrb[27].mxu1  ;;  %v2073_v8 = vld [vmem:[%s5834_s10] sm:$0x1] }
 0xb49   :  { %3720 = vmatprep.mubr.msk.bf16.mxu1 %vm103_vm1, %v2923_v2 }
 0xb4a   :  { %2960 = vmatmul.mubr.bf16.vlgmr.msra.gmra.mrb[28].mxu1 %v2922_v39  ;;  %v2074_v39 = vadd.f32 %v2073_v8, %v5454_v52 }
 0xb4b   :  { %3891 = vmatpush3.bf16.msra.mxu1 %v5941_v56  ;;  %3900 = vmatprep.mubr.msk.bf16.mxu1 %vm4460_vm12, %v5907_v22 }
 0xb4c   :  { %3892 = vmatprep.subr.bf16.mxu1 %v5907_v22  ;;  %v2075_v54 = vsub.f32 0.0, %v2074_v39 }
 0xb4f   :  { %3893 = vmatpush3.bf16.msra.mxu1 %v5942_v33 }
 0xb50   :  { %3894 = vmatprep.subr.bf16.mxu1 %v5907_v22 }
 0xb53   :  { %3895 = vmatpush3.bf16.msra.mxu1 %v5943_v55 }
 0xb54   :  { %3896 = vmatprep.subr.bf16.mxu1 %v5907_v22 }
 0xb57   :  { %3897 = vmatpush3.bf16.msra.mxu1 %v5944_v53 }
 0xb58   :  { %3898 = vmatprep.subr.bf16.mxu1 %v5907_v22 }
 0xb5b   :  { %3899 = vmatpush3.bf16.msra.mxu1 %v5945_v0  ;;  %v2076_v0 = vmul.f32 1.442695, %v2075_v54 }
 0xb5c   :  { %3904 = vmatprep.subr.bf16.mxu1 %v5907_v22 }
 0xb5d   :  { %4368 = vpow2.f32 %v2076_v0 }
 0xc1d   :  { %v2961_v57 = vpop.f32.mrb[28].mxu1 }
 0xc1e   :  { %v2967_v59 = vpack.c.bf16 %v2961_v57, %v2961_v57  ;;  %v2963_v6 = vpop.f32.mrb[29].mxu1 }
 0xc1f   :  { %v2964_v25 = vpop.f32.mrb[30].mxu1 }
 0xc20   :  { %v2969_v1 = vshrl.u32 %v2967_v59, 16  ;;  %v2965_v3 = vpop.f32.mrb[31].mxu1  ;;  %v3057_v19 = vrot.slane %v2967_v59, 1  ;;  %v3147_v28 = vrot.slane %v2967_v59, 2 }
 0xc22   :  { %v3102_v4 = vrot.slane %v2969_v1, 1  ;;  %3901 = vmatmul.mubr.msk.bf16.vlgmr.msra.gmra.mrb[32].mxu1 %vm1698_vm13, %v2969_v1  ;;  %v4369_v1 = vpop.eup %4368 }
 0xc23   :  { %3905 = vmatpush3.bf16.msra.mxu1 %v5946_v5  ;;  %3914 = vmatprep.mubr.msk.bf16.mxu1 %vm4460_vm12, %v5907_v22 }
 0xc24   :  { %3906 = vmatprep.subr.bf16.mxu1 %v5907_v22  ;;  %3943 = vmatmul.mubr.msk.bf16.vlgmr.msra.gmra.mrb[44].mxu0 %vm1698_vm13, %v3102_v4  ;;  %v2078_v4 = vadd.f32 1.0, %v4369_v1 }
 0xc25   :  { %3976 = vmatprep.mubr.msk.bf16.mxu0 %vm4460_vm12, %v5907_v22  ;;  %3961 = vmatpush3.bf16.msra.mxu0 %v4258_v30 }
 0xc26   :  { %3962 = vmatprep.subr.bf16.mxu0 %v5907_v22 }
 0xc27   :  { %3907 = vmatpush3.bf16.msra.mxu1 %v5947_v7 }
 0xc28   :  { %3908 = vmatprep.subr.bf16.mxu1 %v5907_v22 }
 0xc29   :  { %3963 = vmatpush3.bf16.msra.mxu0 %v4259_v31 }
 0xc2a   :  { %3964 = vmatprep.subr.bf16.mxu0 %v5907_v22 }
 0xc2b   :  { %3909 = vmatpush3.bf16.msra.mxu1 %v5948_v9 }
 0xc2c   :  { %3910 = vmatprep.subr.bf16.mxu1 %v5907_v22 }
 0xc2d   :  { %3965 = vmatpush3.bf16.msra.mxu0 %v4260_v32 }
 0xc2e   :  { %3966 = vmatprep.subr.bf16.mxu0 %v5907_v22 }
 0xc2f   :  { %3911 = vmatpush3.bf16.msra.mxu1 %v5949_v11 }
 0xc30   :  { %3912 = vmatprep.subr.bf16.mxu1 %v5907_v22 }
 0xc31   :  { %3967 = vmatpush3.bf16.msra.mxu0 %v4261_v34 }
 0xc32   :  { %3968 = vmatprep.subr.bf16.mxu0 %v5907_v22 }
 0xc33   :  { %3913 = vmatpush3.bf16.msra.mxu1 %v5950_v12 }
 0xc34   :  { %3918 = vmatprep.subr.bf16.mxu1 %v5907_v22 }
 0xc35   :  { %3969 = vmatpush3.bf16.msra.mxu0 %v4262_v35 }
 0xc36   :  { %3915 = vmatmul.mubr.msk.bf16.vlgmr.msra.gmra.mrb[36].mxu1 %vm1698_vm13, %v2967_v59  ;;  %3970 = vmatprep.subr.bf16.mxu0 %v5907_v22 }
 0xc37   :  { %3919 = vmatpush3.bf16.msra.mxu1 %v5951_v13  ;;  %3928 = vmatprep.mubr.msk.bf16.mxu1 %vm4460_vm12, %v5907_v22  ;;  %v4268_v13 = vld [vmem:[%s5837_s13 + $0x10] sm:$0xff]  }
 0xc38   :  { %3920 = vmatprep.subr.bf16.mxu1 %v5907_v22 }
 0xc39   :  { %3971 = vmatpush3.bf16.msra.mxu0 %v4263_v36 }
 0xc3a   :  { %3972 = vmatprep.subr.bf16.mxu0 %v5907_v22 }
 0xc3b   :  { %3921 = vmatpush3.bf16.msra.mxu1 %v5952_v15  ;;  %v4269_v15 = vld [vmem:[%s5837_s13 + $0x18] sm:$0xff]  }
 0xc3c   :  { %3922 = vmatprep.subr.bf16.mxu1 %v5907_v22 }
 0xc3d   :  { %3973 = vmatpush3.bf16.msra.mxu0 %v4264_v37 }
 0xc3e   :  { %3974 = vmatprep.subr.bf16.mxu0 %v5907_v22 }
 0xc3f   :  { %3923 = vmatpush3.bf16.msra.mxu1 %v5953_v16  ;;  %v4270_v16 = vld [vmem:[%s5837_s13 + $0x20] sm:$0xff]  }
 0xc40   :  { %3924 = vmatprep.subr.bf16.mxu1 %v5907_v22 }
 0xc41   :  { %3975 = vmatpush3.bf16.msra.mxu0 %v3277_v40 }
 0xc43   :  { %3925 = vmatpush3.bf16.msra.mxu1 %v5954_v17  ;;  %v4271_v17 = vld [vmem:[%s5837_s13 + $0x28] ss:$0 sps:$4 sm:$0x33]   ;;  %s4461_s13 = smov [#allocation2]  }
 0xc44   :  { %3926 = vmatprep.subr.bf16.mxu1 %v5907_v22  ;;  %s3425_s20 = sshll.u32 %s4461_s13, 4  ;;  %s3426_s20 = int_to_ptr.vmem [resolvable:$true] %s3425_s20 }
 0xc45   :  { %p4439_p1 = scmp.lt.s32.totalorder %s3426_s20, %s3426_s20 }
 0xc47   :  { %3927 = vmatpush3.bf16.msra.mxu1 %v5955_v18  ;;  %v3376_v18 = vsel %vm892_vm8, %v4271_v17, 0 }
 0xc48   :  { %3946 = vmatprep.subr.bf16.mxu1 %v5907_v22 }
 0xc4a   :  { %3929 = vmatmul.mubr.msk.bf16.vlgmr.msra.gmra.mrb[40].mxu1 %vm1698_vm13, %v3057_v19  ;;  %v3726_v19 = vld [vmem:[%s5836_s12] ss:$0 sm:$0xff]  ;;  %s4434_s12 = scalar_lea.vmem %s3426_s20, 32 }
 0xc4b   :  { %3947 = vmatpush3.bf16.msra.mxu1 %v5956_v20  ;;  %3956 = vmatprep.mubr.msk.bf16.mxu1 %vm4460_vm12, %v5907_v22  ;;  %p4435_p0 = scmp.ne.s32.totalorder %s3426_s20, %s4434_s12  ;;  %p4440_p2 = scmp.lt.s32.totalorder %s4434_s12, %s4434_s12 }
 0xc4c   :  { %3948 = vmatprep.subr.bf16.mxu1 %v5907_v22 }
 0xc4d   :  { %p4441_p3 = por %p4440_p2, %p4439_p1 }
 0xc4f   :  { %3949 = vmatpush3.bf16.msra.mxu1 %v5957_v21  ;;  %p4442_p4 = pnand %p4441_p3, %p4435_p0 }
 0xc50   :  { %3950 = vmatprep.subr.bf16.mxu1 %v5907_v22 }
 0xc53   :  { %3951 = vmatpush3.bf16.msra.mxu1 %v5958_v23 }
 0xc54   :  { %3952 = vmatprep.subr.bf16.mxu1 %v5907_v22 }
 0xc57   :  { %3953 = vmatpush3.bf16.msra.mxu1 %v5959_v24 }
 0xc58   :  { %3954 = vmatprep.subr.bf16.mxu1 %v5907_v22 }
 0xc5b   :  { %3955 = vmatpush3.bf16.msra.mxu1 %v5960_v27 }
 0xc5c   :  { %3980 = vmatprep.subr.bf16.mxu1 %v5907_v22 }
 0xc5e   :  { %3957 = vmatmul.mubr.msk.bf16.vlgmr.msra.gmra.mrb[44].mxu1 %vm1698_vm13, %v3147_v28 }
 0xc5f   :  { %3992 = vmatprep.mubr.msk.bf16.mxu1 %vm4460_vm12, %v5907_v22  ;;  %3981 = vmatpush3.bf16.msra.mxu1 %v4266_v41 }
 0xc60   :  { %3982 = vmatprep.subr.bf16.mxu1 %v5907_v22 }
 0xc63   :  { %3983 = vmatpush3.bf16.msra.mxu1 %v4267_v43 }
 0xc64   :  { %3984 = vmatprep.subr.bf16.mxu1 %v5907_v22 }
 0xc67   :  { %3985 = vmatpush3.bf16.msra.mxu1 %v4268_v13 }
 0xc68   :  { %3986 = vmatprep.subr.bf16.mxu1 %v5907_v22 }
 0xc6b   :  { %3987 = vmatpush3.bf16.msra.mxu1 %v4269_v15 }
 0xc6c   :  { %3988 = vmatprep.subr.bf16.mxu1 %v5907_v22 }
 0xc6f   :  { %3989 = vmatpush3.bf16.msra.mxu1 %v4270_v16 }
 0xc70   :  { %3990 = vmatprep.subr.bf16.mxu1 %v5907_v22  ;;  %v3736_v22 = vld [vmem:[%s5838_s14] ss:$0 sm:$0xff] }
 0xc73   :  { %3991 = vmatpush3.bf16.msra.mxu1 %v3376_v18 }
 0xcf5   :  { %v3008_v42 = vpop.f32.mrb[32].mxu1 }
 0xcf6   :  { %v3902_v44 = vpop.f32.mrb[33].mxu1 }
 0xcf7   :  { %v3011_v45 = vpop.f32.mrb[34].mxu1  ;;  %v3140_v48 = vpop.f32.mrb[44].mxu0 }
 0xcf8   :  { %v3903_v61 = vpop.f32.mrb[35].mxu1  ;;  %v3944_v51 = vpop.f32.mrb[45].mxu0 }
 0xcf9   :  { %v3143_v49 = vpop.f32.mrb[46].mxu0 }
 0xcfa   :  { %v3945_v14 = vpop.f32.mrb[47].mxu0 }
 0xd09   :  { %v3050_v62 = vpop.f32.mrb[36].mxu1 }
 0xd0a   :  { %v3051_v47 = vadd.f32 %v3050_v62, %v3008_v42  ;;  %v3916_v63 = vpop.f32.mrb[37].mxu1 }
 0xd0b   :  { %v3053_v10 = vpop.f32.mrb[38].mxu1 }
 0xd0c   :  { %v3917_v26 = vpop.f32.mrb[39].mxu1 }
 0xd1d   :  { %v3095_v46 = vpop.f32.mrb[40].mxu1 }
 0xd1e   :  { %v3101_v29 = vadd.f32 %v3095_v46, %v3051_v47  ;;  %v3930_v58 = vpop.f32.mrb[41].mxu1 }
 0xd1f   :  { %v3098_v60 = vpop.f32.mrb[42].mxu1 }
 0xd20   :  { %v3931_v50 = vpop.f32.mrb[43].mxu1  ;;  %v3146_v2 = vadd.f32 %v3140_v48, %v3101_v29 }
 0xd31   :  { %v3185_v56 = vpop.f32.mrb[44].mxu1 }
 0xd32   :  { %v3191_v33 = vadd.f32 %v3185_v56, %v3146_v2  ;;  %v3958_v55 = vpop.f32.mrb[45].mxu1 }
 0xd33   :  { %v3188_v53 = vpop.f32.mrb[46].mxu1 }
 0xd34   :  { %v3192_v57 = vadd.f32 %v3191_v33, %v2073_v8  ;;  %v3959_v59 = vpop.f32.mrb[47].mxu1 }
 0xd36   :  { %v3193_v6 = vsub.f32 0.0, %v3192_v57 }
 0xd38   :  { %v3194_v25 = vmul.f32 1.442695, %v3193_v6 }
 0xd3a   :  { %4370 = vpow2.f32 %v3194_v25 }
 0xd44   :  { %v4371_v3 = vpop.eup %4370 }
 0xd45   :  { %v3196_v5 = vadd.f32 1.0, %v4371_v3 }
 0xd47   :  { %4372 = vrcp.f32 %v3196_v5 }
 0xd48   :  { %4374 = vrcp.f32 %v2078_v4 }
 0xd51   :  { %v4373_v7 = vpop.eup %4372 }
 0xd52   :  { %v3200_v52 = vrot.slane %v4373_v7, 7  ;;  %v4375_v9 = vpop.eup %4374 }
 0xd54   :  { %v3203_v11 = vsel %vm3202_vm14, %v4375_v9, %v3200_v52 }
 0xd55   :  { %v3204_v12 = vpack.c.bf16 %v3203_v11, %v3203_v11 }
 0xd57   :  { %3977 = vmatmul.mubr.msk.bf16.vlgmr.msra.gmra.mrb[48].mxu0 %vm3272_vm15, %v3204_v12 }
 0xe2a   :  { %v3313_v20 = vpop.f32.mrb[48].mxu0 }
 0xe2b   :  { %v3314_v21 = vadd.f32 %v3726_v19, %v3313_v20  ;;  %v3978_v23 = vpop.f32.mrb[49].mxu0 }
 0xe2c   :  { %v3316_v24 = vpop.f32.mrb[50].mxu0 }
 0xe2d   :  { %4376 = vtanh.f32 %v3314_v21  ;;  %v3979_v27 = vpop.f32.mrb[51].mxu0 }
 0xe37   :  { %v4377_v28 = vpop.eup %4376 }
 0xe38   :  { %v3320_v30 = vpack.c.bf16 %v4377_v28, %v4377_v28 }
 0xe3a   :  { %3993 = vmatmul.mubr.msk.bf16.vlgmr.msra.gmra.mrb[48].mxu1 %vm888_vm9, %v3320_v30 }
 0xf0d   :  { %v3412_v31 = vpop.f32.mrb[48].mxu1 }
 0xf0e   :  { %v3413_v32 = vadd.f32 %v3736_v22, %v3412_v31  ;;  %v3994_v34 = vpop.f32.mrb[49].mxu1 }
 0xf0f   :  { %v3415_v35 = vpop.f32.mrb[50].mxu1 }
 0xf10   :  { %3418 = vst [vmem:[#allocation2] sm:$0x3] %v3413_v32  ;;  %v3995_v36 = vpop.f32.mrb[51].mxu1 }
 0xf11   :  { %4445 = shalt.err (!%p4442_p4)
}
 0xf12   :  { %s4446_s14 = scalar_lea.hbm %s5839_s15, 32 }
 0xf13   :  { %p4447_p5 = scmp.ne.s32.totalorder %s5839_s15, %s4446_s14  ;;  %p4450_p6 = scmp.lt.u32.totalorder %s4446_s14, %s5839_s15 }
 0xf15   :  { %p4452_p7 = pnand %p4450_p6, %p4447_p5 }
 0xf17   :  { %4455 = shalt.err (!%p4452_p7)
}
 0xf18   :  { %3428 = dma.vmem_to_hbm [thread:$0]  %s3426_s20, 32, %s5839_s15, [#allocation3]  }
 0xf19   :  { %4456 = dma.done.wait [#allocation3], 32  }
 0xf1a   :  { %4457 = vsyncadd [#allocation3], 4294967264 }
 0xf1b   :  { %3432 = vsyncpa [#allocation3], 1 }

</bundles_post_ra>
